<compile_context>
chip_gen: v5e
topology: v5e:2x2
jax: 0.10.0
libtpu: 0.0.40
codegen_flags: <defaults>
</compile_context>

<pallas_src>
import functools

import numpy as np

import jax
import jax.numpy as jnp
from jax.experimental import pallas as pl
from jax.experimental.pallas import tpu as pltpu


def _round_up(x, m):
    return ((x + m - 1) // m) * m


def patch_proj_kernel(x_ref, w_ref, b_ref, o_ref):
    """One MXU call per grid step: (tm, K) @ (K, E) + bias, f32 accumulate."""
    acc = jnp.dot(x_ref[...], w_ref[...], preferred_element_type=jnp.float32)
    o_ref[...] = (acc + b_ref[...]).astype(o_ref.dtype)


def patch_embed_matmul(patches, weight_t, bias, *, tm=512,
                       out_dtype=jnp.bfloat16):
    """patches: (M, K), weight_t: (K, E), bias: (E,) -> (M, E) in out_dtype.

    Weight and bias stay fully resident (single-buffered) in VMEM; only
    (tm, K) patch tiles and (tm, E) output tiles are streamed.  Grid is 1-D
    over M and marked "parallel" (megacore sharding on multi-TC chips).
    """
    M, K = patches.shape
    Kw, E = weight_t.shape
    assert K == Kw

    # Lane-dense, MXU-filling output: pad E to a multiple of 256
    # (2x256x256 MXU on v6e/v7x; no-op for real VideoMAE E = 768 / 1024).
    E_pad = _round_up(E, 256)
    if E_pad != E:
        weight_t = jnp.pad(weight_t, ((0, 0), (0, E_pad - E)))
        bias = jnp.pad(bias, (0, E_pad - E))

    # M tile: multiples of 256; pad M instead of asserting divisibility.
    tm_eff = min(tm, _round_up(M, 256))
    M_pad = _round_up(M, tm_eff)
    if M_pad != M:
        patches = jnp.pad(patches, ((0, M_pad - M), (0, 0)))

    bias2d = bias.reshape(1, E_pad).astype(jnp.float32)

    in_b = patches.dtype.itemsize
    w_b = weight_t.dtype.itemsize
    out_b = np.dtype(out_dtype).itemsize

    # VMEM working set: 2x streamed patch tile + 2x streamed out tile +
    # 1x resident weight + bias.  Only request a larger scoped limit when the
    # estimate exceeds the most conservative default (v5e: 16 MiB).
    vmem_est = (2 * tm_eff * K * in_b + K * E_pad * w_b + E_pad * 4
                + 2 * tm_eff * E_pad * out_b)
    vmem_limit = None
    if vmem_est > 12 * 1024 * 1024:
        # Cap at v7x's 64 MiB/TC physical VMEM.
        vmem_limit = min(int(vmem_est * 1.5), 64 * 1024 * 1024)

    cost = pl.CostEstimate(
        flops=2 * M_pad * K * E_pad,
        transcendentals=0,
        bytes_accessed=(M_pad * K * in_b + K * E_pad * w_b + E_pad * 4
                        + M_pad * E_pad * out_b),
    )

    out = pl.pallas_call(
        patch_proj_kernel,
        out_shape=jax.ShapeDtypeStruct((M_pad, E_pad), out_dtype),
        grid=(M_pad // tm_eff,),
        in_specs=[
            # Streamed patch tile (default double-buffering).
            pl.BlockSpec((tm_eff, K), lambda i: (i, 0)),
            # Resident weight / bias: constant block index -> single buffer.
            pl.BlockSpec((K, E_pad), lambda i: (0, 0),
                         pipeline_mode=pl.Buffered(1)),
            pl.BlockSpec((1, E_pad), lambda i: (0, 0),
                         pipeline_mode=pl.Buffered(1)),
        ],
        out_specs=pl.BlockSpec((tm_eff, E_pad), lambda i: (i, 0)),
        compiler_params=pltpu.CompilerParams(
            dimension_semantics=("parallel",),
            vmem_limit_bytes=vmem_limit,
        ),
        cost_estimate=cost,
    )(patches, weight_t, bias2d)

    return out[:M, :E]


def prepare_patch_embed_weight(weight, compute_dtype=jnp.bfloat16):
    """Conv3d weight (E, C, tt, p, p) -> (K, E) matmul weight.

    Done ONCE outside the jitted forward so the (E,K)->(K,E) transpose + cast
    is not re-materialized every training step.
    """
    E = weight.shape[0]
    return jnp.asarray(weight).reshape(E, -1).T.astype(compute_dtype)


def patch_embed_forward(x, w_kxe, bias, *, patch_size, tubelet_size,
                        compute_dtype=jnp.bfloat16, out_dtype=jnp.bfloat16,
                        tm=512):
    """Forward pass of PatchEmbed.

    x:      (B, C, T, H, W) float32 (NCTHW, same as PyTorch)
    w_kxe:  (K, E) pre-prepared matmul weight (see prepare_patch_embed_weight)
    bias:   (E,)
    returns (B, num_patches, E) in out_dtype,
            num_patches = (T//tt)*(H//p)*(W//p)
    """
    B, C, T, H, W = x.shape
    p, tt = patch_size, tubelet_size
    K, E = w_kxe.shape
    Tp, Hp, Wp = T // tt, H // p, W // p
    N = Tp * Hp * Wp
    assert K == C * tt * p * p

    # --- glue: patchify with Conv3d's (c, kt, kh, kw) flattening order.
    # Cast to bf16 first so the transpose writes / re-reads half the bytes.
    # TODO(synk): fold this patchify into the kernel input DMA (see header).
    xr = x.astype(compute_dtype).reshape(B, C, Tp, tt, Hp, p, Wp, p)
    xr = jnp.transpose(xr, (0, 2, 4, 6, 1, 3, 5, 7))
    patches = xr.reshape(B * N, K)

    out = patch_embed_matmul(
        patches, w_kxe.astype(compute_dtype), bias.astype(jnp.float32),
        tm=tm, out_dtype=out_dtype,
    )
    return out.reshape(B, N, E)


if __name__ == "__main__":
    # Small config consistent with the module: img=16, patch=8, C=4,
    # embed_dim=32, frames=4, tubelet=2  ->  num_patches = 2*2*2 = 8, K = 512.
    B, C, T, H, W = 2, 4, 4, 16, 16
    patch_size, tubelet_size, embed_dim = 8, 2, 32

    key = jax.random.PRNGKey(0)
    kx, kw, kb = jax.random.split(key, 3)

    x = jax.random.normal(kx, (B, C, T, H, W), dtype=jnp.float32)
    weight = jax.random.normal(
        kw, (embed_dim, C, tubelet_size, patch_size, patch_size),
        dtype=jnp.float32,
    ) * 0.02
    bias = jax.random.normal(kb, (embed_dim,), dtype=jnp.float32) * 0.02

    # Weight prepared once, outside jit (perf review item).
    w_kxe = prepare_patch_embed_weight(weight)

    fwd = jax.jit(functools.partial(
        patch_embed_forward, patch_size=patch_size, tubelet_size=tubelet_size
    ))
    out = fwd(x, w_kxe, bias)
    out = jax.block_until_ready(out)

    # Reference: Conv3d equivalent in f32.  Kernel uses bf16 inputs, f32 MXU
    # accumulation and bf16 output, so tolerances are loosened accordingly.
    ref = jax.lax.conv_general_dilated(
        x, weight,
        window_strides=(tubelet_size, patch_size, patch_size),
        padding="VALID",
        dimension_numbers=("NCTHW", "OITHW", "NCTHW"),
    ) + bias.reshape(1, embed_dim, 1, 1, 1)
    ref = ref.reshape(B, embed_dim, -1).transpose(0, 2, 1)

    num_patches = (T // tubelet_size) * (H // patch_size) * (W // patch_size)
    assert out.shape == (B, num_patches, embed_dim), out.shape
    out_f32 = out.astype(jnp.float32)
    assert jnp.allclose(out_f32, ref, atol=3e-2, rtol=3e-2), float(
        jnp.max(jnp.abs(out_f32 - ref))
    )

    print("KERNEL_OK")
</pallas_src>

<mosaic_0001>
module attributes {stable_mosaic.version = 11 : i64} {
  func.func @patch_proj_kernel(%arg0: i32, %arg1: memref<256x512xbf16, #tpu.memory_space<vmem>>, %arg2: memref<512x256xbf16, #tpu.memory_space<vmem>>, %arg3: memref<1x256xf32, #tpu.memory_space<vmem>>, %arg4: memref<256x256xbf16, #tpu.memory_space<vmem>>) attributes {dimension_semantics = [#tpu.dimension_semantics<parallel>], iteration_bounds = array<i64: 1>, scalar_prefetch = 0 : i64, scratch_operands = 0 : i64, tpu.core_type = #tpu.core_type<tc>, window_params = [{transform_indices = @transform_0, window_bounds = array<i64: 256, 512>}, {pipeline_mode = #tpu.pipeline_mode<synchronous>, transform_indices = @transform_1, window_bounds = array<i64: 512, 256>}, {pipeline_mode = #tpu.pipeline_mode<synchronous>, transform_indices = @transform_2, window_bounds = array<i64: 1, 256>}, {transform_indices = @transform_3, window_bounds = array<i64: 256, 256>}]} {
    %c0 = arith.constant 0 : index
    %c0_0 = arith.constant 0 : index
    %0 = vector.load %arg1[%c0, %c0_0] : memref<256x512xbf16, #tpu.memory_space<vmem>>, vector<256x512xbf16>
    %c0_1 = arith.constant 0 : index
    %c0_2 = arith.constant 0 : index
    %1 = vector.load %arg2[%c0_1, %c0_2] : memref<512x256xbf16, #tpu.memory_space<vmem>>, vector<512x256xbf16>
    %cst = arith.constant dense<0.000000e+00> : vector<256x256xf32>
    %2 = tpu.matmul %0, %1, %cst {dimension_numbers = #tpu.dot_dimension_numbers<[1], [0], [0], [1], [0, 0, 1, 1], [], []>} : vector<256x512xbf16>, vector<512x256xbf16>, vector<256x256xf32> -> vector<256x256xf32>
    %c0_3 = arith.constant 0 : index
    %c0_4 = arith.constant 0 : index
    %3 = vector.load %arg3[%c0_3, %c0_4] : memref<1x256xf32, #tpu.memory_space<vmem>>, vector<1x256xf32>
    %4 = vector.broadcast %3 : vector<1x256xf32> to vector<256x256xf32>
    %5 = arith.addf %2, %4 : vector<256x256xf32>
    %6 = arith.truncf %5 : vector<256x256xf32> to vector<256x256xbf16>
    %c0_5 = arith.constant 0 : index
    %c0_6 = arith.constant 0 : index
    %7 = vector.load %arg4[%c0_5, %c0_6] : memref<256x256xbf16, #tpu.memory_space<vmem>>, vector<256x256xbf16>
    tpu.vector_store %arg4[%c0_5, %c0_6], %6 {strides = array<i32>} : memref<256x256xbf16, #tpu.memory_space<vmem>>, vector<256x256xbf16>,
    return
  }
  func.func @transform_0(%arg0: i32) -> (i32, i32) {
    %c0_i32 = arith.constant 0 : i32
    %c0_i32_0 = arith.constant 0 : i32
    return %arg0, %c0_i32 : i32, i32
  }
  func.func @transform_1(%arg0: i32) -> (i32, i32) {
    %c0_i32 = arith.constant 0 : i32
    %c0_i32_0 = arith.constant 0 : i32
    %c0_i32_1 = arith.constant 0 : i32
    return %c0_i32, %c0_i32_0 : i32, i32
  }
  func.func @transform_2(%arg0: i32) -> (i32, i32) {
    %c0_i32 = arith.constant 0 : i32
    %c0_i32_0 = arith.constant 0 : i32
    %c0_i32_1 = arith.constant 0 : i32
    return %c0_i32, %c0_i32_0 : i32, i32
  }
  func.func @transform_3(%arg0: i32) -> (i32, i32) {
    %c0_i32 = arith.constant 0 : i32
    %c0_i32_0 = arith.constant 0 : i32
    return %arg0, %c0_i32 : i32, i32
  }
}

</mosaic_0001>

<bundles_post_ra>
// kernel: patch_embed_forward.1
= control target key start
LH: loop header
LB: loop body
LE: loop exit
PB: predicated region body
PF: predicated region fallthrough
CT: control target
= control target key end

     0   :  { %s3519_s1 = inlined_call_operand.vmem [shape: bf16[512,256], index: 1, kind: input, shape index: {}]   ;;  %s3520_s0 = inlined_call_operand.vmem [shape: bf16[256,512], index: 0, kind: input, shape index: {}]   ;;  %s3521_s2 = inlined_call_operand.vmem [shape: f32[1,256], index: 2, kind: input, shape index: {}]   ;;  %s3522_s3 = inlined_call_operand.vmem [shape: bf16[256,256], index: 3, kind: output, shape index: {}]  }
   0x1   :  { %v1882_v0 = vld [vmem:[%s3519_s1 + $0x70] sm:$0xf]  ;;  %v2159_v1 = vld [vmem:[%s3519_s1 + $0x74] sm:$0xf0]  ;;  %v1874_v11 = vld [vmem:[%s3519_s1 + $0x60] sm:$0xf] }
   0x2   :  { %v1946_v2 = vld [vmem:[%s3519_s1 + $0xf0] sm:$0xf]  ;;  %v1883_v3 = vor.u32 %v2159_v1, %v1882_v0  ;;  %v2175_v4 = vld [vmem:[%s3519_s1 + $0xf4] sm:$0xf0]  ;;  %v2157_v13 = vld [vmem:[%s3519_s1 + $0x64] sm:$0xf0] }
   0x3   :  { %v2010_v5 = vld [vmem:[%s3519_s1 + $0x170] sm:$0xf]  ;;  %v2191_v6 = vld [vmem:[%s3519_s1 + $0x174] sm:$0xf0]  ;;  %v1947_v7 = vor.u32 %v2175_v4, %v1946_v2  ;;  %v1938_v14 = vld [vmem:[%s3519_s1 + $0xe0] sm:$0xf]  ;;  %v1875_v16 = vor.u32 %v2157_v13, %v1874_v11 }
   0x4   :  { %v2011_v8 = vor.u32 %v2191_v6, %v2010_v5  ;;  %v2074_v9 = vld [vmem:[%s3519_s1 + $0x1f0] sm:$0xf]  ;;  %v2207_v10 = vld [vmem:[%s3519_s1 + $0x1f4] sm:$0xf0]  ;;  %788 = vmatpush.bf16.msra.mxu0 %v1883_v3  ;;  %v2173_v15 = vld [vmem:[%s3519_s1 + $0xe4] sm:$0xf0] }
   0x5   :  { %v2075_v12 = vor.u32 %v2207_v10, %v2074_v9  ;;  %877 = vmatpush.bf16.msra.mxu1 %v1947_v7  ;;  %v1939_v17 = vor.u32 %v2173_v15, %v1938_v14  ;;  %v2002_v18 = vld [vmem:[%s3519_s1 + $0x160] sm:$0xf]  ;;  %v2189_v19 = vld [vmem:[%s3519_s1 + $0x164] sm:$0xf0]  ;;  %v1866_v23 = vld [vmem:[%s3519_s1 + $0x50] sm:$0xf] }
   0x6   :  { %966 = vmatpush.bf16.msra.mxu2 %v2011_v8  ;;  %v2066_v20 = vld [vmem:[%s3519_s1 + $0x1e0] sm:$0xf]  ;;  %v2003_v21 = vor.u32 %v2189_v19, %v2002_v18  ;;  %v2205_v22 = vld [vmem:[%s3519_s1 + $0x1e4] sm:$0xf0]  ;;  %v2155_v24 = vld [vmem:[%s3519_s1 + $0x54] sm:$0xf0] }
   0x7   :  { %1055 = vmatpush.bf16.msra.mxu3 %v2075_v12  ;;  %v2067_v25 = vor.u32 %v2205_v22, %v2066_v20  ;;  %v1930_v26 = vld [vmem:[%s3519_s1 + $0xd0] sm:$0xf]  ;;  %v2171_v27 = vld [vmem:[%s3519_s1 + $0xd4] sm:$0xf0]  ;;  %v1867_v29 = vor.u32 %v2155_v24, %v1866_v23  ;;  %v1858_v35 = vld [vmem:[%s3519_s1 + $0x40] sm:$0xf] }
   0x8   :  { %v1994_v28 = vld [vmem:[%s3519_s1 + $0x150] sm:$0xf]  ;;  %789 = vmatpush.bf16.msra.mxu0 %v1875_v16  ;;  %v2187_v30 = vld [vmem:[%s3519_s1 + $0x154] sm:$0xf0]  ;;  %v1931_v33 = vor.u32 %v2171_v27, %v1930_v26  ;;  %v2153_v36 = vld [vmem:[%s3519_s1 + $0x44] sm:$0xf0] }
   0x9   :  { %v2058_v31 = vld [vmem:[%s3519_s1 + $0x1d0] sm:$0xf]  ;;  %v2203_v32 = vld [vmem:[%s3519_s1 + $0x1d4] sm:$0xf0]  ;;  %878 = vmatpush.bf16.msra.mxu1 %v1939_v17  ;;  %v1995_v34 = vor.u32 %v2187_v30, %v1994_v28  ;;  %v1922_v37 = vld [vmem:[%s3519_s1 + $0xc0] sm:$0xf]  ;;  %v1859_v44 = vor.u32 %v2153_v36, %v1858_v35 }
   0xa   :  { %967 = vmatpush.bf16.msra.mxu2 %v2003_v21  ;;  %v2059_v38 = vor.u32 %v2203_v32, %v2058_v31  ;;  %v2169_v39 = vld [vmem:[%s3519_s1 + $0xc4] sm:$0xf0]  ;;  %v1986_v40 = vld [vmem:[%s3519_s1 + $0x140] sm:$0xf]  ;;  %v1850_v47 = vld [vmem:[%s3519_s1 + $0x30] sm:$0xf] }
   0xb   :  { %1056 = vmatpush.bf16.msra.mxu3 %v2067_v25  ;;  %v2185_v41 = vld [vmem:[%s3519_s1 + $0x144] sm:$0xf0]  ;;  %v2050_v42 = vld [vmem:[%s3519_s1 + $0x1c0] sm:$0xf]  ;;  %v1923_v45 = vor.u32 %v2169_v39, %v1922_v37  ;;  %v2151_v48 = vld [vmem:[%s3519_s1 + $0x34] sm:$0xf0] }
   0xc   :  { %v2201_v43 = vld [vmem:[%s3519_s1 + $0x1c4] sm:$0xf0]  ;;  %790 = vmatpush.bf16.msra.mxu0 %v1867_v29  ;;  %v1987_v46 = vor.u32 %v2185_v41, %v1986_v40  ;;  %v1914_v49 = vld [vmem:[%s3519_s1 + $0xb0] sm:$0xf]  ;;  %v2167_v51 = vld [vmem:[%s3519_s1 + $0xb4] sm:$0xf0]  ;;  %v1851_v56 = vor.u32 %v2151_v48, %v1850_v47 }
   0xd   :  { %879 = vmatpush.bf16.msra.mxu1 %v1931_v33  ;;  %v2051_v50 = vor.u32 %v2201_v43, %v2050_v42  ;;  %v1978_v52 = vld [vmem:[%s3519_s1 + $0x130] sm:$0xf]  ;;  %v2183_v53 = vld [vmem:[%s3519_s1 + $0x134] sm:$0xf0]  ;;  %v1915_v57 = vor.u32 %v2167_v51, %v1914_v49  ;;  %v1842_v59 = vld [vmem:[%s3519_s1 + $0x20] sm:$0xf] }
   0xe   :  { %968 = vmatpush.bf16.msra.mxu2 %v1995_v34  ;;  %v2042_v54 = vld [vmem:[%s3519_s1 + $0x1b0] sm:$0xf]  ;;  %v2199_v55 = vld [vmem:[%s3519_s1 + $0x1b4] sm:$0xf0]  ;;  %v1979_v58 = vor.u32 %v2183_v53, %v1978_v52  ;;  %v2149_v60 = vld [vmem:[%s3519_s1 + $0x24] sm:$0xf0] }
   0xf   :  { %1057 = vmatpush.bf16.msra.mxu3 %v2059_v38  ;;  %v1906_v61 = vld [vmem:[%s3519_s1 + $0xa0] sm:$0xf]  ;;  %v2043_v62 = vor.u32 %v2199_v55, %v2042_v54  ;;  %v2165_v63 = vld [vmem:[%s3519_s1 + $0xa4] sm:$0xf0]  ;;  %v1843_v4 = vor.u32 %v2149_v60, %v1842_v59  ;;  %v1834_v7 = vld [vmem:[%s3519_s1 + $0x10] sm:$0xf] }
  0x10   :  { %791 = vmatpush.bf16.msra.mxu0 %v1859_v44  ;;  %v1970_v0 = vld [vmem:[%s3519_s1 + $0x120] sm:$0xf]  ;;  %v2181_v1 = vld [vmem:[%s3519_s1 + $0x124] sm:$0xf0]  ;;  %v1907_v5 = vor.u32 %v2165_v63, %v1906_v61  ;;  %v2147_v8 = vld [vmem:[%s3519_s1 + $0x14] sm:$0xf0] }
  0x11   :  { %880 = vmatpush.bf16.msra.mxu1 %v1923_v45  ;;  %v2034_v2 = vld [vmem:[%s3519_s1 + $0x1a0] sm:$0xf]  ;;  %v2197_v3 = vld [vmem:[%s3519_s1 + $0x1a4] sm:$0xf0]  ;;  %v1971_v6 = vor.u32 %v2181_v1, %v1970_v0  ;;  %v1898_v9 = vld [vmem:[%s3519_s1 + $0x90] sm:$0xf]  ;;  %v1835_v17 = vor.u32 %v2147_v8, %v1834_v7 }
  0x12   :  { %969 = vmatpush.bf16.msra.mxu2 %v1987_v46  ;;  %v2035_v10 = vor.u32 %v2197_v3, %v2034_v2  ;;  %v2163_v11 = vld [vmem:[%s3519_s1 + $0x94] sm:$0xf0]  ;;  %v1962_v12 = vld [vmem:[%s3519_s1 + $0x110] sm:$0xf]  ;;  %v1826_v16 = vld [vmem:[%s3519_s1] sm:$0xf] }
  0x13   :  { %1058 = vmatpush.bf16.msra.mxu3 %v2051_v50  ;;  %v2179_v13 = vld [vmem:[%s3519_s1 + $0x114] sm:$0xf0]  ;;  %v2026_v14 = vld [vmem:[%s3519_s1 + $0x190] sm:$0xf]  ;;  %v2145_v18 = vld [vmem:[%s3519_s1 + $0x4] sm:$0xf0]  ;;  %v1899_v21 = vor.u32 %v2163_v11, %v1898_v9 }
  0x14   :  { %792 = vmatpush.bf16.msra.mxu0 %v1851_v56  ;;  %v2195_v15 = vld [vmem:[%s3519_s1 + $0x194] sm:$0xf0]  ;;  %v1890_v19 = vld [vmem:[%s3519_s1 + $0x80] sm:$0xf]  ;;  %v2161_v20 = vld [vmem:[%s3519_s1 + $0x84] sm:$0xf0]  ;;  %v1963_v22 = vor.u32 %v2179_v13, %v1962_v12  ;;  %v1827_v33 = vor.u32 %v2145_v18, %v1826_v16 }
  0x15   :  { %881 = vmatpush.bf16.msra.mxu1 %v1915_v57  ;;  %v1954_v23 = vld [vmem:[%s3519_s1 + $0x100] sm:$0xf]  ;;  %v2177_v24 = vld [vmem:[%s3519_s1 + $0x104] sm:$0xf0]  ;;  %v2027_v26 = vor.u32 %v2195_v15, %v2026_v14  ;;  %v2082_v29 = vld [vmem:[%s3520_s0 + $0xc] sm:$0xf0]  ;;  %v1891_v37 = vor.u32 %v2161_v20, %v1890_v19 }
  0x16   :  { %970 = vmatpush.bf16.msra.mxu2 %v1979_v58  ;;  %v2018_v25 = vld [vmem:[%s3519_s1 + $0x180] sm:$0xf]  ;;  %v2193_v27 = vld [vmem:[%s3519_s1 + $0x184] sm:$0xf0]  ;;  %v2080_v30 = vld [vmem:[%s3520_s0 + $0x4] sm:$0xf]  ;;  %v1955_v38 = vor.u32 %v2177_v24, %v1954_v23 }
  0x17   :  { %1059 = vmatpush.bf16.msra.mxu3 %v2043_v62  ;;  %v1570_v28 = vld [vmem:[%s3520_s0] sm:$0xf]  ;;  %v2190_v31 = vld [vmem:[%s3519_s1 + $0x174] sm:$0xf]  ;;  %v2012_v32 = vld [vmem:[%s3519_s1 + $0x178] sm:$0xf0]  ;;  %v2019_v42 = vor.u32 %v2193_v27, %v2018_v25 }
  0x18   :  { %793 = vmatpush.bf16.msra.mxu0 %v1843_v4  ;;  %v1572_v34 = vld [vmem:[%s3520_s0 + $0x10] sm:$0xf0]  ;;  %v2076_v36 = vld [vmem:[%s3519_s1 + $0x1f8] sm:$0xf0]  ;;  %v1578_v39 = vld [vmem:[%s3520_s0 + $0x8] sm:$0xf]  ;;  %v2015_v44 = vor.u32 %v2190_v31, %v2012_v32  ;;  %v2462_v47 = vor.u32 %v2082_v29, %v1570_v28 }
  0x19   :  { %882 = vmatpush.bf16.msra.mxu1 %v1907_v5  ;;  %v2206_v35 = vld [vmem:[%s3519_s1 + $0x1f4] sm:$0xf]  ;;  %v2083_v40 = vld [vmem:[%s3520_s0 + $0x14] sm:$0xf0]  ;;  %v2081_v41 = vld [vmem:[%s3520_s0 + $0xc] sm:$0xf]  ;;  %v2470_v51 = vor.u32 %v2080_v30, %v1572_v34 }
  0x1a   :  { %971 = vmatpush.bf16.msra.mxu2 %v1971_v6  ;;  %v1580_v43 = vld [vmem:[%s3520_s0 + $0x18] sm:$0xf0]  ;;  %v2158_v45 = vld [vmem:[%s3519_s1 + $0x74] sm:$0xf]  ;;  %v2079_v48 = vor.u32 %v2206_v35, %v2076_v36  ;;  %v2472_v52 = vor.u32 %v2083_v40, %v1578_v39  ;;  %v2188_v56 = vld [vmem:[%s3519_s1 + $0x164] sm:$0xf] }
  0x1b   :  { %1060 = vmatpush.bf16.msra.mxu3 %v2035_v10  ;;  %v1884_v46 = vld [vmem:[%s3519_s1 + $0x78] sm:$0xf0]  ;;  %v2174_v49 = vld [vmem:[%s3519_s1 + $0xf4] sm:$0xf]  ;;  %v2474_v53 = vor.u32 %v2081_v41, %v1580_v43  ;;  %v2004_v57 = vld [vmem:[%s3519_s1 + $0x168] sm:$0xf0] }
  0x1c   :  { %794 = vmatpush.bf16.msra.mxu0 %v1835_v17  ;;  %v1948_v50 = vld [vmem:[%s3519_s1 + $0xf8] sm:$0xf0]  ;;  %v1887_v54 = vor.u32 %v2158_v45, %v1884_v46  ;;  %v2156_v58 = vld [vmem:[%s3519_s1 + $0x64] sm:$0xf]  ;;  %v2007_v59 = vor.u32 %v2188_v56, %v2004_v57  ;;  %v1876_v60 = vld [vmem:[%s3519_s1 + $0x68] sm:$0xf0] }
  0x1d   :  { %883 = vmatpush.bf16.msra.mxu1 %v1899_v21  ;;  %v1951_v55 = vor.u32 %v2174_v49, %v1948_v50  ;;  %v2204_v61 = vld [vmem:[%s3519_s1 + $0x1e4] sm:$0xf]  ;;  %v2068_v62 = vld [vmem:[%s3519_s1 + $0x1e8] sm:$0xf0]  ;;  %v1879_v63 = vor.u32 %v2156_v58, %v1876_v60  ;;  %v1586_v4 = vld [vmem:[%s3520_s0 + $0x20] sm:$0xf] }
  0x1e   :  { %972 = vmatpush.bf16.msra.mxu2 %v1963_v22  ;;  %v2071_v0 = vor.u32 %v2204_v61, %v2068_v62  ;;  %v2172_v1 = vld [vmem:[%s3519_s1 + $0xe4] sm:$0xf]  ;;  %v1940_v2 = vld [vmem:[%s3519_s1 + $0xe8] sm:$0xf0]  ;;  %v2086_v5 = vld [vmem:[%s3520_s0 + $0x2c] sm:$0xf0] }
  0x1f   :  { %1061 = vmatpush.bf16.msra.mxu3 %v2027_v26  ;;  %v1943_v3 = vor.u32 %v2172_v1, %v1940_v2  ;;  %v2084_v6 = vld [vmem:[%s3520_s0 + $0x24] sm:$0xf]  ;;  %v1588_v7 = vld [vmem:[%s3520_s0 + $0x30] sm:$0xf0]  ;;  %v1594_v8 = vld [vmem:[%s3520_s0 + $0x28] sm:$0xf]  ;;  %v2528_v12 = vor.u32 %v2086_v5, %v1586_v4 }
  0x20   :  { %795 = vmatpush.bf16.msra.mxu0 %v1827_v33  ;;  %v2087_v9 = vld [vmem:[%s3520_s0 + $0x34] sm:$0xf0]  ;;  %v2085_v10 = vld [vmem:[%s3520_s0 + $0x2c] sm:$0xf]  ;;  %v1596_v11 = vld [vmem:[%s3520_s0 + $0x38] sm:$0xf0]  ;;  %v2530_v13 = vor.u32 %v2084_v6, %v1588_v7 }
  0x21   :  { %884 = vmatpush.bf16.msra.mxu1 %v1891_v37  ;;  %v2532_v14 = vor.u32 %v2087_v9, %v1594_v8  ;;  %v2534_v15 = vor.u32 %v2085_v10, %v1596_v11  ;;  %v1602_v16 = vld [vmem:[%s3520_s0 + $0x40] sm:$0xf]  ;;  %v2090_v17 = vld [vmem:[%s3520_s0 + $0x4c] sm:$0xf0]  ;;  %v2088_v18 = vld [vmem:[%s3520_s0 + $0x44] sm:$0xf] }
  0x22   :  { %973 = vmatpush.bf16.msra.mxu2 %v1955_v38  ;;  %v1604_v19 = vld [vmem:[%s3520_s0 + $0x50] sm:$0xf0]  ;;  %v1610_v20 = vld [vmem:[%s3520_s0 + $0x48] sm:$0xf]  ;;  %v2091_v21 = vld [vmem:[%s3520_s0 + $0x54] sm:$0xf0]  ;;  %v2564_v24 = vor.u32 %v2090_v17, %v1602_v16 }
  0x23   :  { %1062 = vmatpush.bf16.msra.mxu3 %v2019_v42  ;;  %796 = vmatmul.bf16.vlgmr.msra.gmra.mxu0 %v2462_v47  ;;  %v2089_v22 = vld [vmem:[%s3520_s0 + $0x4c] sm:$0xf]  ;;  %v1612_v23 = vld [vmem:[%s3520_s0 + $0x58] sm:$0xf0]  ;;  %v2566_v25 = vor.u32 %v2088_v18, %v1604_v19  ;;  %v2568_v26 = vor.u32 %v2091_v21, %v1610_v20  ;;  %v2186_v28 = vld [vmem:[%s3519_s1 + $0x154] sm:$0xf] }
  0x24   :  { %885 = vmatmul.bf16.vlgmr.msra.gmra.mxu1 %v2470_v51  ;;  %1144 = vmatpush.bf16.msrb.mxu0 %v1887_v54  ;;  %v2570_v27 = vor.u32 %v2089_v22, %v1612_v23  ;;  %v1996_v29 = vld [vmem:[%s3519_s1 + $0x158] sm:$0xf0]  ;;  %v2154_v30 = vld [vmem:[%s3519_s1 + $0x54] sm:$0xf]  ;;  %v1618_v40 = vld [vmem:[%s3520_s0 + $0x60] sm:$0xf] }
  0x25   :  { %974 = vmatmul.bf16.vlgmr.msra.gmra.mxu2 %v2472_v52  ;;  %1233 = vmatpush.bf16.msrb.mxu1 %v1951_v55  ;;  %v1999_v31 = vor.u32 %v2186_v28, %v1996_v29  ;;  %v1868_v32 = vld [vmem:[%s3519_s1 + $0x58] sm:$0xf0]  ;;  %v2202_v33 = vld [vmem:[%s3519_s1 + $0x1d4] sm:$0xf]  ;;  %v2094_v41 = vld [vmem:[%s3520_s0 + $0x6c] sm:$0xf0] }
  0x26   :  { %1322 = vmatpush.bf16.msrb.mxu2 %v2015_v44  ;;  %1063 = vmatmul.bf16.vlgmr.msra.gmra.mxu3 %v2474_v53  ;;  %v2060_v34 = vld [vmem:[%s3519_s1 + $0x1d8] sm:$0xf0]  ;;  %v1871_v35 = vor.u32 %v2154_v30, %v1868_v32  ;;  %v2170_v37 = vld [vmem:[%s3519_s1 + $0xd4] sm:$0xf]  ;;  %v2092_v42 = vld [vmem:[%s3520_s0 + $0x64] sm:$0xf]  ;;  %v2624_v49 = vor.u32 %v2094_v41, %v1618_v40 }
  0x27   :  { %1411 = vmatpush.bf16.msrb.mxu3 %v2079_v48  ;;  %v2063_v36 = vor.u32 %v2202_v33, %v2060_v34  ;;  %v1932_v38 = vld [vmem:[%s3519_s1 + $0xd8] sm:$0xf0]  ;;  %v1620_v43 = vld [vmem:[%s3520_s0 + $0x70] sm:$0xf0]  ;;  %v1626_v44 = vld [vmem:[%s3520_s0 + $0x68] sm:$0xf] }
  0x28   :  { %1145 = vmatpush.bf16.msrb.mxu0 %v1879_v63  ;;  %v1935_v39 = vor.u32 %v2170_v37, %v1932_v38  ;;  %v2095_v45 = vld [vmem:[%s3520_s0 + $0x74] sm:$0xf0]  ;;  %v2093_v46 = vld [vmem:[%s3520_s0 + $0x6c] sm:$0xf]  ;;  %v1628_v48 = vld [vmem:[%s3520_s0 + $0x78] sm:$0xf0]  ;;  %v2626_v50 = vor.u32 %v2092_v42, %v1620_v43 }
  0x29   :  { %1234 = vmatpush.bf16.msrb.mxu1 %v1943_v3  ;;  %v2628_v54 = vor.u32 %v2095_v45, %v1626_v44  ;;  %v2630_v55 = vor.u32 %v2093_v46, %v1628_v48  ;;  %v1634_v56 = vld [vmem:[%s3520_s0 + $0x80] sm:$0xf]  ;;  %v2098_v57 = vld [vmem:[%s3520_s0 + $0x8c] sm:$0xf0]  ;;  %v2096_v58 = vld [vmem:[%s3520_s0 + $0x84] sm:$0xf] }
  0x2a   :  { %1323 = vmatpush.bf16.msrb.mxu2 %v2007_v59  ;;  %v1636_v59 = vld [vmem:[%s3520_s0 + $0x90] sm:$0xf0]  ;;  %v1642_v60 = vld [vmem:[%s3520_s0 + $0x88] sm:$0xf]  ;;  %v2099_v61 = vld [vmem:[%s3520_s0 + $0x94] sm:$0xf0] }
  0x2b   :  { %1412 = vmatpush.bf16.msrb.mxu3 %v2071_v0  ;;  %v2097_v62 = vld [vmem:[%s3520_s0 + $0x8c] sm:$0xf]  ;;  %v1644_v63 = vld [vmem:[%s3520_s0 + $0x98] sm:$0xf0]  ;;  %v2660_v0 = vor.u32 %v2098_v57, %v1634_v56  ;;  %v2662_v1 = vor.u32 %v2096_v58, %v1636_v59  ;;  %v2664_v2 = vor.u32 %v2099_v61, %v1642_v60  ;;  %v2184_v4 = vld [vmem:[%s3519_s1 + $0x144] sm:$0xf] }
  0x2c   :  { %1146 = vmatpush.bf16.msrb.mxu0 %v1871_v35  ;;  %v2666_v3 = vor.u32 %v2097_v62, %v1644_v63  ;;  %v1988_v5 = vld [vmem:[%s3519_s1 + $0x148] sm:$0xf0]  ;;  %v2152_v6 = vld [vmem:[%s3519_s1 + $0x44] sm:$0xf]  ;;  %v1650_v20 = vld [vmem:[%s3520_s0 + $0xa0] sm:$0xf] }
  0x2d   :  { %1235 = vmatpush.bf16.msrb.mxu1 %v1935_v39  ;;  %v1991_v7 = vor.u32 %v2184_v4, %v1988_v5  ;;  %v1860_v8 = vld [vmem:[%s3519_s1 + $0x48] sm:$0xf0]  ;;  %v2200_v9 = vld [vmem:[%s3519_s1 + $0x1c4] sm:$0xf]  ;;  %v2102_v21 = vld [vmem:[%s3520_s0 + $0xac] sm:$0xf0] }
  0x2e   :  { %1324 = vmatpush.bf16.msrb.mxu2 %v1999_v31  ;;  %v2052_v10 = vld [vmem:[%s3519_s1 + $0x1c8] sm:$0xf0]  ;;  %v1863_v11 = vor.u32 %v2152_v6, %v1860_v8  ;;  %v2168_v17 = vld [vmem:[%s3519_s1 + $0xc4] sm:$0xf]  ;;  %v1652_v23 = vld [vmem:[%s3520_s0 + $0xb0] sm:$0xf0]  ;;  %v2720_v32 = vor.u32 %v2102_v21, %v1650_v20 }
  0x2f   :  { %1413 = vmatpush.bf16.msrb.mxu3 %v2063_v36  ;;  %v2055_v16 = vor.u32 %v2200_v9, %v2052_v10  ;;  %v1924_v18 = vld [vmem:[%s3519_s1 + $0xc8] sm:$0xf0]  ;;  %v2100_v22 = vld [vmem:[%s3520_s0 + $0xa4] sm:$0xf]  ;;  %v1658_v28 = vld [vmem:[%s3520_s0 + $0xa8] sm:$0xf] }
  0x30   :  { %v1927_v19 = vor.u32 %v2168_v17, %v1924_v18  ;;  %1147 = vmatpush.bf16.msrb.mxu0 %v1863_v11  ;;  %v2103_v29 = vld [vmem:[%s3520_s0 + $0xb4] sm:$0xf0]  ;;  %v2101_v30 = vld [vmem:[%s3520_s0 + $0xac] sm:$0xf]  ;;  %v1660_v31 = vld [vmem:[%s3520_s0 + $0xb8] sm:$0xf0]  ;;  %v2722_v33 = vor.u32 %v2100_v22, %v1652_v23 }
  0x31   :  { %v2724_v34 = vor.u32 %v2103_v29, %v1658_v28  ;;  %v2726_v35 = vor.u32 %v2101_v30, %v1660_v31  ;;  %v1666_v36 = vld [vmem:[%s3520_s0 + $0xc0] sm:$0xf]  ;;  %v2106_v37 = vld [vmem:[%s3520_s0 + $0xcc] sm:$0xf0]  ;;  %v2104_v38 = vld [vmem:[%s3520_s0 + $0xc4] sm:$0xf] }
  0x32   :  { %1325 = vmatpush.bf16.msrb.mxu2 %v1991_v7  ;;  %1236 = vmatpush.bf16.msrb.mxu1 %v1927_v19  ;;  %v1668_v39 = vld [vmem:[%s3520_s0 + $0xd0] sm:$0xf0]  ;;  %v1674_v40 = vld [vmem:[%s3520_s0 + $0xc8] sm:$0xf]  ;;  %v2107_v41 = vld [vmem:[%s3520_s0 + $0xd4] sm:$0xf0]  ;;  %v2756_v44 = vor.u32 %v2106_v37, %v1666_v36 }
  0x33   :  { %801 = vmatmul.bf16.gmra.mxu0 %v2528_v12  ;;  %1414 = vmatpush.bf16.msrb.mxu3 %v2055_v16  ;;  %v2105_v42 = vld [vmem:[%s3520_s0 + $0xcc] sm:$0xf]  ;;  %v1676_v43 = vld [vmem:[%s3520_s0 + $0xd8] sm:$0xf0]  ;;  %v2758_v45 = vor.u32 %v2104_v38, %v1668_v39  ;;  %v2760_v46 = vor.u32 %v2107_v41, %v1674_v40  ;;  %v2182_v56 = vld [vmem:[%s3519_s1 + $0x134] sm:$0xf] }
  0x34   :  { %890 = vmatmul.bf16.gmra.mxu1 %v2530_v13  ;;  %v2762_v48 = vor.u32 %v2105_v42, %v1676_v43  ;;  %v1980_v57 = vld [vmem:[%s3519_s1 + $0x138] sm:$0xf0]  ;;  %v2150_v58 = vld [vmem:[%s3519_s1 + $0x34] sm:$0xf]  ;;  %v1682_v8 = vld [vmem:[%s3520_s0 + $0xe0] sm:$0xf] }
  0x35   :  { %979 = vmatmul.bf16.gmra.mxu2 %v2532_v14  ;;  %v1983_v59 = vor.u32 %v2182_v56, %v1980_v57  ;;  %v1852_v60 = vld [vmem:[%s3519_s1 + $0x38] sm:$0xf0]  ;;  %v2198_v61 = vld [vmem:[%s3519_s1 + $0x1b4] sm:$0xf]  ;;  %v2110_v9 = vld [vmem:[%s3520_s0 + $0xec] sm:$0xf0] }
  0x36   :  { %1068 = vmatmul.bf16.gmra.mxu3 %v2534_v15  ;;  %v2044_v62 = vld [vmem:[%s3519_s1 + $0x1b8] sm:$0xf0]  ;;  %v1855_v63 = vor.u32 %v2150_v58, %v1852_v60  ;;  %v2166_v5 = vld [vmem:[%s3519_s1 + $0xb4] sm:$0xf]  ;;  %v2108_v10 = vld [vmem:[%s3520_s0 + $0xe4] sm:$0xf]  ;;  %v2816_v20 = vor.u32 %v2110_v9, %v1682_v8 }
  0x37   :  { %v2047_v4 = vor.u32 %v2198_v61, %v2044_v62  ;;  %1326 = vmatpush.bf16.msrb.mxu2 %v1983_v59  ;;  %v1916_v6 = vld [vmem:[%s3519_s1 + $0xb8] sm:$0xf0]  ;;  %v1684_v11 = vld [vmem:[%s3520_s0 + $0xf0] sm:$0xf0]  ;;  %v1690_v16 = vld [vmem:[%s3520_s0 + $0xe8] sm:$0xf] }
  0x38   :  { %1148 = vmatpush.bf16.msrb.mxu0 %v1855_v63  ;;  %v1919_v7 = vor.u32 %v2166_v5, %v1916_v6  ;;  %v2111_v17 = vld [vmem:[%s3520_s0 + $0xf4] sm:$0xf0]  ;;  %v2109_v18 = vld [vmem:[%s3520_s0 + $0xec] sm:$0xf]  ;;  %v1692_v19 = vld [vmem:[%s3520_s0 + $0xf8] sm:$0xf0]  ;;  %v2818_v21 = vor.u32 %v2108_v10, %v1684_v11 }
  0x39   :  { %1415 = vmatpush.bf16.msrb.mxu3 %v2047_v4  ;;  %v2820_v22 = vor.u32 %v2111_v17, %v1690_v16  ;;  %v2822_v23 = vor.u32 %v2109_v18, %v1692_v19  ;;  %v2831_v28 = vld [vmem:[%s3521_s2] sm:$0x3]  ;;  %v2114_v31 = vld [vmem:[%s3520_s0 + $0x10c] sm:$0xf0]  ;;  %v2112_v36 = vld [vmem:[%s3520_s0 + $0x104] sm:$0xf] }
  0x3a   :  { %1237 = vmatpush.bf16.msrb.mxu1 %v1919_v7  ;;  %v2834_v29 = vperm.slane %v2831_v28, 0  ;;  %v1698_v30 = vld [vmem:[%s3520_s0 + $0x100] sm:$0xf]  ;;  %v1700_v37 = vld [vmem:[%s3520_s0 + $0x110] sm:$0xf0] }
  0x3b   :  { %v1706_v38 = vld [vmem:[%s3520_s0 + $0x108] sm:$0xf]  ;;  %v2115_v39 = vld [vmem:[%s3520_s0 + $0x114] sm:$0xf0]  ;;  %v2113_v40 = vld [vmem:[%s3520_s0 + $0x10c] sm:$0xf]  ;;  %v2860_v42 = vor.u32 %v2114_v31, %v1698_v30  ;;  %v2862_v56 = vor.u32 %v2112_v36, %v1700_v37 }
  0x3c   :  { %v1708_v41 = vld [vmem:[%s3520_s0 + $0x118] sm:$0xf0]  ;;  %v2864_v57 = vor.u32 %v2115_v39, %v1706_v38  ;;  %v2180_v62 = vld [vmem:[%s3519_s1 + $0x124] sm:$0xf]  ;;  %v1972_v63 = vld [vmem:[%s3519_s1 + $0x128] sm:$0xf0] }
  0x3d   :  { %v2867_v60 = vor.u32 %v2113_v40, %v1708_v41  ;;  %v2148_v4 = vld [vmem:[%s3519_s1 + $0x24] sm:$0xf]  ;;  %v1975_v5 = vor.u32 %v2180_v62, %v1972_v63  ;;  %v1844_v6 = vld [vmem:[%s3519_s1 + $0x28] sm:$0xf0]  ;;  %v1714_v40 = vld [vmem:[%s3520_s0 + $0x120] sm:$0xf] }
  0x3e   :  { %v2196_v7 = vld [vmem:[%s3519_s1 + $0x1a4] sm:$0xf]  ;;  %v2036_v8 = vld [vmem:[%s3519_s1 + $0x1a8] sm:$0xf0]  ;;  %v1847_v10 = vor.u32 %v2148_v4, %v1844_v6  ;;  %v2118_v41 = vld [vmem:[%s3520_s0 + $0x12c] sm:$0xf0] }
  0x3f   :  { %v2039_v11 = vor.u32 %v2196_v7, %v2036_v8  ;;  %1327 = vmatpush.bf16.msrb.mxu2 %v1975_v5  ;;  %v2164_v36 = vld [vmem:[%s3519_s1 + $0xa4] sm:$0xf]  ;;  %v1908_v37 = vld [vmem:[%s3519_s1 + $0xa8] sm:$0xf0]  ;;  %v1724_v63 = vld [vmem:[%s3520_s0 + $0x138] sm:$0xf0]  ;;  %v2924_v5 = vor.u32 %v2118_v41, %v1714_v40 }
  0x40   :  { %1149 = vmatpush.bf16.msrb.mxu0 %v1847_v10  ;;  %v1911_v39 = vor.u32 %v2164_v36, %v1908_v37  ;;  %v2117_v62 = vld [vmem:[%s3520_s0 + $0x12c] sm:$0xf] }
  0x41   :  { %1416 = vmatpush.bf16.msrb.mxu3 %v2039_v11 }
  0x42   :  { %1238 = vmatpush.bf16.msrb.mxu1 %v1911_v39 }
  0x43   :  { %806 = vmatmul.bf16.gmra.mxu0 %v2564_v24 }
  0x44   :  { %895 = vmatmul.bf16.gmra.mxu1 %v2566_v25 }
  0x45   :  { %984 = vmatmul.bf16.gmra.mxu2 %v2568_v26 }
  0x46   :  { %1073 = vmatmul.bf16.gmra.mxu3 %v2570_v27 }
  0x53   :  { %811 = vmatmul.bf16.gmra.mxu0 %v2624_v49 }
  0x54   :  { %900 = vmatmul.bf16.gmra.mxu1 %v2626_v50 }
  0x55   :  { %989 = vmatmul.bf16.gmra.mxu2 %v2628_v54 }
  0x56   :  { %1078 = vmatmul.bf16.gmra.mxu3 %v2630_v55 }
  0x63   :  { %816 = vmatmul.bf16.gmra.mxu0 %v2660_v0 }
  0x64   :  { %905 = vmatmul.bf16.gmra.mxu1 %v2662_v1 }
  0x65   :  { %994 = vmatmul.bf16.gmra.mxu2 %v2664_v2 }
  0x66   :  { %1083 = vmatmul.bf16.gmra.mxu3 %v2666_v3 }
  0x73   :  { %821 = vmatmul.bf16.gmra.mxu0 %v2720_v32 }
  0x74   :  { %910 = vmatmul.bf16.gmra.mxu1 %v2722_v33 }
  0x75   :  { %999 = vmatmul.bf16.gmra.mxu2 %v2724_v34 }
  0x76   :  { %1088 = vmatmul.bf16.gmra.mxu3 %v2726_v35 }
  0x83   :  { %826 = vmatmul.bf16.gmra.mxu0 %v2756_v44 }
  0x84   :  { %915 = vmatmul.bf16.gmra.mxu1 %v2758_v45 }
  0x85   :  { %1004 = vmatmul.bf16.gmra.mxu2 %v2760_v46 }
  0x86   :  { %1093 = vmatmul.bf16.gmra.mxu3 %v2762_v48 }
  0x93   :  { %831 = vmatmul.bf16.gmra.mxu0 %v2816_v20 }
  0x94   :  { %920 = vmatmul.bf16.gmra.mxu1 %v2818_v21 }
  0x95   :  { %1009 = vmatmul.bf16.gmra.mxu2 %v2820_v22 }
  0x96   :  { %1098 = vmatmul.bf16.gmra.mxu3 %v2822_v23 }
  0xa0   :  { %v797_v43 = vpop.f32.mrf.mxu0 }
  0xa1   :  { %v798_v58 = vadd.f32 %v797_v43, %v2834_v29  ;;  %v886_v59 = vpop.f32.mrf.mxu1  ;;  %v2116_v43 = vld [vmem:[%s3520_s0 + $0x124] sm:$0xf] }
  0xa3   :  { %v887_v61 = vadd.f32 %v886_v59, %v798_v58  ;;  %836 = vmatmul.bf16.gmra.mxu0 %v2860_v42  ;;  %v1716_v58 = vld [vmem:[%s3520_s0 + $0x130] sm:$0xf0]  ;;  %v1722_v59 = vld [vmem:[%s3520_s0 + $0x128] sm:$0xf] }
  0xa4   :  { %925 = vmatmul.bf16.gmra.mxu1 %v2862_v56 }
  0xa5   :  { %1014 = vmatmul.bf16.gmra.mxu2 %v2864_v57 }
  0xa6   :  { %1103 = vmatmul.bf16.gmra.mxu3 %v2867_v60 }
  0xa8   :  { %v975_v9 = vpop.f32.mrf.mxu2  ;;  %v799_v18 = vpop.f32.mrf.mxu0 }
  0xa9   :  { %v976_v16 = vadd.f32 %v975_v9, %v887_v61  ;;  %v1064_v17 = vpop.f32.mrf.mxu3  ;;  %v800_v19 = vadd.f32 %v799_v18, %v2834_v29  ;;  %v888_v30 = vpop.f32.mrf.mxu1  ;;  %v2119_v61 = vld [vmem:[%s3520_s0 + $0x134] sm:$0xf0]  ;;  %v2926_v9 = vor.u32 %v2116_v43, %v1716_v58  ;;  %v1730_v58 = vld [vmem:[%s3520_s0 + $0x140] sm:$0xf] }
  0xaa   :  { %v2928_v10 = vor.u32 %v2119_v61, %v1722_v59  ;;  %v2122_v59 = vld [vmem:[%s3520_s0 + $0x14c] sm:$0xf0]  ;;  %v2120_v61 = vld [vmem:[%s3520_s0 + $0x144] sm:$0xf] }
  0xab   :  { %v2892_v31 = vadd.f32 %v1064_v17, %v976_v16  ;;  %v889_v38 = vadd.f32 %v888_v30, %v800_v19  ;;  %v2931_v17 = vor.u32 %v2117_v62, %v1724_v63  ;;  %v1732_v62 = vld [vmem:[%s3520_s0 + $0x150] sm:$0xf0]  ;;  %v1738_v63 = vld [vmem:[%s3520_s0 + $0x148] sm:$0xf] }
  0xad   :  { %3545 = vst [vmem:[#allocation2_spill] sm:$0xff] %v2931_v17 }
  0xb0   :  { %v977_v4 = vpop.f32.mrf.mxu2  ;;  %v802_v8 = vpop.f32.mrf.mxu0 }
  0xb1   :  { %v978_v6 = vadd.f32 %v977_v4, %v889_v38  ;;  %v1066_v7 = vpop.f32.mrf.mxu3  ;;  %v803_v11 = vadd.f32 %v802_v8, %v2834_v29  ;;  %v891_v16 = vpop.f32.mrf.mxu1  ;;  %v2123_v4 = vld [vmem:[%s3520_s0 + $0x154] sm:$0xf0] }
  0xb3   :  { %v2933_v18 = vadd.f32 %v1066_v7, %v978_v6  ;;  %v892_v19 = vadd.f32 %v891_v16, %v803_v11  ;;  %841 = vmatmul.bf16.gmra.mxu0 %v2924_v5  ;;  %v2121_v6 = vld [vmem:[%s3520_s0 + $0x14c] sm:$0xf]  ;;  %v1740_v7 = vld [vmem:[%s3520_s0 + $0x158] sm:$0xf0]  ;;  %v2966_v11 = vor.u32 %v2122_v59, %v1730_v58  ;;  %v2146_v59 = vld [vmem:[%s3519_s1 + $0x14] sm:$0xf] }
  0xb4   :  { %930 = vmatmul.bf16.gmra.mxu1 %v2926_v9  ;;  %v1964_v58 = vld [vmem:[%s3519_s1 + $0x118] sm:$0xf0] }
  0xb5   :  { %1019 = vmatmul.bf16.gmra.mxu2 %v2928_v10  ;;  %3547 = vst [vmem:[#allocation4_spill] sm:$0xff] %v2966_v11 }
  0xb6   :  { %1108 = vmatmul.bf16.gmra.mxu3 %v2931_v17 }
  0xb8   :  { %v980_v30 = vpop.f32.mrf.mxu2  ;;  %v804_v38 = vpop.f32.mrf.mxu0 }
  0xb9   :  { %v981_v36 = vadd.f32 %v980_v30, %v892_v19  ;;  %v1069_v37 = vpop.f32.mrf.mxu3  ;;  %v805_v39 = vadd.f32 %v804_v38, %v2834_v29  ;;  %v893_v40 = vpop.f32.mrf.mxu1 }
  0xbb   :  { %v2940_v41 = vadd.f32 %v1069_v37, %v981_v36  ;;  %v894_v43 = vadd.f32 %v893_v40, %v805_v39  ;;  %v2968_v36 = vor.u32 %v2120_v61, %v1732_v62  ;;  %v2970_v37 = vor.u32 %v2123_v4, %v1738_v63  ;;  %v1836_v62 = vld [vmem:[%s3519_s1 + $0x18] sm:$0xf0]  ;;  %v2194_v63 = vld [vmem:[%s3519_s1 + $0x194] sm:$0xf] }
  0xbc   :  { %v2973_v40 = vor.u32 %v2121_v6, %v1740_v7  ;;  %v2028_v4 = vld [vmem:[%s3519_s1 + $0x198] sm:$0xf0]  ;;  %v1839_v7 = vor.u32 %v2146_v59, %v1836_v62 }
  0xbd   :  { %3546 = vst [vmem:[#allocation3_spill] sm:$0xff] %v2940_v41  ;;  %v1900_v59 = vld [vmem:[%s3519_s1 + $0x98] sm:$0xf0] }
  0xbe   :  { %3548 = vst [vmem:[#allocation5_spill] sm:$0xff] %v2968_v36  ;;  %1150 = vmatpush.bf16.msrb.mxu0 %v1839_v7  ;;  %v1754_v7 = vld [vmem:[%s3520_s0 + $0x168] sm:$0xf] }
  0xbf   :  { %3549 = vst [vmem:[#allocation6_spill] sm:$0xff] %v2970_v37 }
  0xc0   :  { %v982_v8 = vpop.f32.mrf.mxu2  ;;  %v807_v30 = vpop.f32.mrf.mxu0  ;;  %3550 = vst [vmem:[#allocation7_spill] sm:$0xff] %v2973_v40 }
  0xc1   :  { %v983_v16 = vadd.f32 %v982_v8, %v894_v43  ;;  %v1071_v19 = vpop.f32.mrf.mxu3  ;;  %v808_v38 = vadd.f32 %v807_v30, %v2834_v29  ;;  %v896_v39 = vpop.f32.mrf.mxu1  ;;  %v2178_v43 = vld [vmem:[%s3519_s1 + $0x114] sm:$0xf]  ;;  %v2031_v8 = vor.u32 %v2194_v63, %v2028_v4  ;;  %v2126_v63 = vld [vmem:[%s3520_s0 + $0x16c] sm:$0xf0]  ;;  %v2124_v4 = vld [vmem:[%s3520_s0 + $0x164] sm:$0xf] }
  0xc2   :  { %v1967_v61 = vor.u32 %v2178_v43, %v1964_v58  ;;  %v2162_v58 = vld [vmem:[%s3519_s1 + $0x94] sm:$0xf] }
  0xc3   :  { %v2975_v41 = vadd.f32 %v1071_v19, %v983_v16  ;;  %v897_v17 = vadd.f32 %v896_v39, %v808_v38  ;;  %846 = vmatmul.bf16.gmra.mxu0 %v2966_v11  ;;  %1417 = vmatpush.bf16.msrb.mxu3 %v2031_v8  ;;  %v2127_v8 = vld [vmem:[%s3520_s0 + $0x174] sm:$0xf0] }
  0xc4   :  { %935 = vmatmul.bf16.gmra.mxu1 %v2968_v36  ;;  %1328 = vmatpush.bf16.msrb.mxu2 %v1967_v61  ;;  %v1746_v61 = vld [vmem:[%s3520_s0 + $0x160] sm:$0xf] }
  0xc5   :  { %3551 = vst [vmem:[#allocation8_spill] sm:$0xff] %v2975_v41  ;;  %1024 = vmatmul.bf16.gmra.mxu2 %v2970_v37 }
  0xc6   :  { %1113 = vmatmul.bf16.gmra.mxu3 %v2973_v40  ;;  %v3036_v40 = vor.u32 %v2127_v8, %v1754_v7 }
  0xc8   :  { %v985_v6 = vpop.f32.mrf.mxu2  ;;  %v809_v30 = vpop.f32.mrf.mxu0  ;;  %3555 = vst [vmem:[#allocation12_spill] sm:$0xff] %v3036_v40 }
  0xc9   :  { %v986_v16 = vadd.f32 %v985_v6, %v897_v17  ;;  %v1074_v19 = vpop.f32.mrf.mxu3  ;;  %v810_v38 = vadd.f32 %v809_v30, %v2834_v29  ;;  %v898_v39 = vpop.f32.mrf.mxu1  ;;  %v1903_v17 = vor.u32 %v2162_v58, %v1900_v59  ;;  %v1748_v6 = vld [vmem:[%s3520_s0 + $0x170] sm:$0xf0] }
  0xcb   :  { %v3000_v43 = vadd.f32 %v1074_v19, %v986_v16  ;;  %v899_v62 = vadd.f32 %v898_v39, %v810_v38  ;;  %1239 = vmatpush.bf16.msrb.mxu1 %v1903_v17  ;;  %v2125_v16 = vld [vmem:[%s3520_s0 + $0x16c] sm:$0xf]  ;;  %v1756_v19 = vld [vmem:[%s3520_s0 + $0x178] sm:$0xf0]  ;;  %v3032_v38 = vor.u32 %v2126_v63, %v1746_v61 }
  0xcc   :  { %v3039_v36 = vor.u32 %v2125_v16, %v1756_v19  ;;  %v2130_v19 = vld [vmem:[%s3520_s0 + $0x18c] sm:$0xf0] }
  0xcd   :  { %3552 = vst [vmem:[#allocation9_spill] sm:$0xff] %v3000_v43  ;;  %v3034_v43 = vor.u32 %v2124_v4, %v1748_v6 }
  0xce   :  { %3553 = vst [vmem:[#allocation10_spill] sm:$0xff] %v3032_v38 }
  0xcf   :  { %3554 = vst [vmem:[#allocation11_spill] sm:$0xff] %v3034_v43 }
  0xd0   :  { %v987_v30 = vpop.f32.mrf.mxu2  ;;  %v812_v59 = vpop.f32.mrf.mxu0  ;;  %3556 = vst [vmem:[#allocation13_spill] sm:$0xff] %v3039_v36 }
  0xd1   :  { %v988_v39 = vadd.f32 %v987_v30, %v899_v62  ;;  %v1076_v58 = vpop.f32.mrf.mxu3  ;;  %v813_v17 = vadd.f32 %v812_v59, %v2834_v29  ;;  %v901_v37 = vpop.f32.mrf.mxu1  ;;  %v1764_v30 = vld [vmem:[%s3520_s0 + $0x190] sm:$0xf0]  ;;  %v2129_v59 = vld [vmem:[%s3520_s0 + $0x18c] sm:$0xf] }
  0xd3   :  { %v3041_v41 = vadd.f32 %v1076_v58, %v988_v39  ;;  %v902_v11 = vadd.f32 %v901_v37, %v813_v17  ;;  %851 = vmatmul.bf16.gmra.mxu0 %v3032_v38  ;;  %v1762_v37 = vld [vmem:[%s3520_s0 + $0x180] sm:$0xf]  ;;  %v1770_v39 = vld [vmem:[%s3520_s0 + $0x188] sm:$0xf]  ;;  %v2131_v58 = vld [vmem:[%s3520_s0 + $0x194] sm:$0xf0] }
  0xd4   :  { %940 = vmatmul.bf16.gmra.mxu1 %v3034_v43  ;;  %v1772_v17 = vld [vmem:[%s3520_s0 + $0x198] sm:$0xf0] }
  0xd5   :  { %3557 = vst [vmem:[#allocation14_spill] sm:$0xff] %v3041_v41  ;;  %1029 = vmatmul.bf16.gmra.mxu2 %v3036_v40  ;;  %v3081_v43 = vor.u32 %v2129_v59, %v1772_v17 }
  0xd6   :  { %1118 = vmatmul.bf16.gmra.mxu3 %v3039_v36 }
  0xd7   :  { %3562 = vst [vmem:[#allocation19_spill] sm:$0xff] %v3081_v43 }
  0xd8   :  { %v990_v62 = vpop.f32.mrf.mxu2  ;;  %v814_v4 = vpop.f32.mrf.mxu0 }
  0xd9   :  { %v991_v61 = vadd.f32 %v990_v62, %v902_v11  ;;  %v1079_v63 = vpop.f32.mrf.mxu3  ;;  %v815_v6 = vadd.f32 %v814_v4, %v2834_v29  ;;  %v903_v7 = vpop.f32.mrf.mxu1  ;;  %v2128_v11 = vld [vmem:[%s3520_s0 + $0x184] sm:$0xf] }
  0xdb   :  { %v3048_v8 = vadd.f32 %v1079_v63, %v991_v61  ;;  %v904_v16 = vadd.f32 %v903_v7, %v815_v6  ;;  %v3074_v61 = vor.u32 %v2130_v19, %v1762_v37  ;;  %v3076_v7 = vor.u32 %v2128_v11, %v1764_v30  ;;  %v1956_v37 = vld [vmem:[%s3519_s1 + $0x108] sm:$0xf0]  ;;  %v2192_v11 = vld [vmem:[%s3519_s1 + $0x184] sm:$0xf] }
  0xdc   :  { %v1828_v19 = vld [vmem:[%s3519_s1 + $0x8] sm:$0xf0] }
  0xdd   :  { %3558 = vst [vmem:[#allocation15_spill] sm:$0xff] %v3048_v8  ;;  %v3078_v8 = vor.u32 %v2131_v58, %v1770_v39  ;;  %v2020_v30 = vld [vmem:[%s3519_s1 + $0x188] sm:$0xf0] }
  0xde   :  { %3559 = vst [vmem:[#allocation16_spill] sm:$0xff] %v3074_v61  ;;  %v2023_v59 = vor.u32 %v2192_v11, %v2020_v30  ;;  %v2134_v11 = vld [vmem:[%s3520_s0 + $0x1ac] sm:$0xf0]  ;;  %v2132_v30 = vld [vmem:[%s3520_s0 + $0x1a4] sm:$0xf] }
  0xdf   :  { %3560 = vst [vmem:[#allocation17_spill] sm:$0xff] %v3076_v7 }
  0xe0   :  { %v992_v62 = vpop.f32.mrf.mxu2  ;;  %v817_v6 = vpop.f32.mrf.mxu0  ;;  %3561 = vst [vmem:[#allocation18_spill] sm:$0xff] %v3078_v8  ;;  %1418 = vmatpush.bf16.msrb.mxu3 %v2023_v59  ;;  %v2135_v59 = vld [vmem:[%s3520_s0 + $0x1b4] sm:$0xf0] }
  0xe1   :  { %v993_v63 = vadd.f32 %v992_v62, %v904_v16  ;;  %v1081_v4 = vpop.f32.mrf.mxu3  ;;  %v818_v36 = vadd.f32 %v817_v6, %v2834_v29  ;;  %v906_v40 = vpop.f32.mrf.mxu1  ;;  %v2176_v16 = vld [vmem:[%s3519_s1 + $0x104] sm:$0xf] }
  0xe3   :  { %v3083_v41 = vadd.f32 %v1081_v4, %v993_v63  ;;  %v907_v38 = vadd.f32 %v906_v40, %v818_v36  ;;  %856 = vmatmul.bf16.gmra.mxu0 %v3074_v61  ;;  %v2144_v36 = vld [vmem:[%s3519_s1 + $0x4] sm:$0xf]  ;;  %v1959_v40 = vor.u32 %v2176_v16, %v1956_v37 }
  0xe4   :  { %945 = vmatmul.bf16.gmra.mxu1 %v3076_v7  ;;  %v1831_v58 = vor.u32 %v2144_v36, %v1828_v19  ;;  %v2160_v37 = vld [vmem:[%s3519_s1 + $0x84] sm:$0xf]  ;;  %v1892_v36 = vld [vmem:[%s3519_s1 + $0x88] sm:$0xf0] }
  0xe5   :  { %3563 = vst [vmem:[#allocation20_spill] sm:$0xff] %v3083_v41  ;;  %1034 = vmatmul.bf16.gmra.mxu2 %v3078_v8 }
  0xe6   :  { %1123 = vmatmul.bf16.gmra.mxu3 %v3081_v43  ;;  %1329 = vmatpush.bf16.msrb.mxu2 %v1959_v40  ;;  %v1778_v40 = vld [vmem:[%s3520_s0 + $0x1a0] sm:$0xf] }
  0xe7   :  { %1151 = vmatpush.bf16.msrb.mxu0 %v1831_v58  ;;  %v1786_v58 = vld [vmem:[%s3520_s0 + $0x1a8] sm:$0xf] }
  0xe8   :  { %v995_v39 = vpop.f32.mrf.mxu2  ;;  %v819_v63 = vpop.f32.mrf.mxu0  ;;  %v3144_v43 = vor.u32 %v2135_v59, %v1786_v58 }
  0xe9   :  { %v996_v17 = vadd.f32 %v995_v39, %v907_v38  ;;  %v1084_v62 = vpop.f32.mrf.mxu3  ;;  %v820_v4 = vadd.f32 %v819_v63, %v2834_v29  ;;  %v908_v6 = vpop.f32.mrf.mxu1  ;;  %v1895_v38 = vor.u32 %v2160_v37, %v1892_v36  ;;  %v1780_v39 = vld [vmem:[%s3520_s0 + $0x1b0] sm:$0xf0] }
  0xea   :  { %3567 = vst [vmem:[#allocation24_spill] sm:$0xff] %v3144_v43 }
  0xeb   :  { %v3108_v16 = vadd.f32 %v1084_v62, %v996_v17  ;;  %v909_v19 = vadd.f32 %v908_v6, %v820_v4  ;;  %1240 = vmatpush.bf16.msrb.mxu1 %v1895_v38  ;;  %v2133_v17 = vld [vmem:[%s3520_s0 + $0x1ac] sm:$0xf]  ;;  %v1788_v62 = vld [vmem:[%s3520_s0 + $0x1b8] sm:$0xf0]  ;;  %v3140_v4 = vor.u32 %v2134_v11, %v1778_v40 }
  0xec   :  { %v3147_v7 = vor.u32 %v2133_v17, %v1788_v62  ;;  %v2138_v62 = vld [vmem:[%s3520_s0 + $0x1cc] sm:$0xf0] }
  0xed   :  { %3564 = vst [vmem:[#allocation21_spill] sm:$0xff] %v3108_v16  ;;  %v3142_v16 = vor.u32 %v2132_v30, %v1780_v39 }
  0xee   :  { %3565 = vst [vmem:[#allocation22_spill] sm:$0xff] %v3140_v4 }
  0xef   :  { %3566 = vst [vmem:[#allocation23_spill] sm:$0xff] %v3142_v16 }
  0xf0   :  { %v997_v63 = vpop.f32.mrf.mxu2  ;;  %v822_v36 = vpop.f32.mrf.mxu0  ;;  %3568 = vst [vmem:[#allocation25_spill] sm:$0xff] %v3147_v7 }
  0xf1   :  { %v998_v6 = vadd.f32 %v997_v63, %v909_v19  ;;  %v1086_v37 = vpop.f32.mrf.mxu3  ;;  %v823_v38 = vadd.f32 %v822_v36, %v2834_v29  ;;  %v911_v8 = vpop.f32.mrf.mxu1  ;;  %v1796_v63 = vld [vmem:[%s3520_s0 + $0x1d0] sm:$0xf0]  ;;  %v2137_v36 = vld [vmem:[%s3520_s0 + $0x1cc] sm:$0xf] }
  0xf3   :  { %v3149_v41 = vadd.f32 %v1086_v37, %v998_v6  ;;  %v912_v61 = vadd.f32 %v911_v8, %v823_v38  ;;  %861 = vmatmul.bf16.gmra.mxu0 %v3140_v4  ;;  %v1794_v8 = vld [vmem:[%s3520_s0 + $0x1c0] sm:$0xf]  ;;  %v1802_v6 = vld [vmem:[%s3520_s0 + $0x1c8] sm:$0xf]  ;;  %v2139_v37 = vld [vmem:[%s3520_s0 + $0x1d4] sm:$0xf0] }
  0xf4   :  { %950 = vmatmul.bf16.gmra.mxu1 %v3142_v16  ;;  %v1804_v38 = vld [vmem:[%s3520_s0 + $0x1d8] sm:$0xf0] }
  0xf5   :  { %3569 = vst [vmem:[#allocation26_spill] sm:$0xff] %v3149_v41  ;;  %1039 = vmatmul.bf16.gmra.mxu2 %v3144_v43  ;;  %v3189_v16 = vor.u32 %v2137_v36, %v1804_v38  ;;  %v1812_v38 = vld [vmem:[%s3520_s0 + $0x1f0] sm:$0xf0] }
  0xf6   :  { %1128 = vmatmul.bf16.gmra.mxu3 %v3147_v7 }
  0xf7   :  { %3574 = vst [vmem:[#allocation31_spill] sm:$0xff] %v3189_v16 }
  0xf8   :  { %v1000_v19 = vpop.f32.mrf.mxu2  ;;  %v824_v30 = vpop.f32.mrf.mxu0 }
  0xf9   :  { %v1001_v40 = vadd.f32 %v1000_v19, %v912_v61  ;;  %v1089_v11 = vpop.f32.mrf.mxu3  ;;  %v825_v39 = vadd.f32 %v824_v30, %v2834_v29  ;;  %v913_v58 = vpop.f32.mrf.mxu1  ;;  %v2136_v61 = vld [vmem:[%s3520_s0 + $0x1c4] sm:$0xf] }
  0xfb   :  { %v3156_v59 = vadd.f32 %v1089_v11, %v1001_v40  ;;  %v914_v17 = vadd.f32 %v913_v58, %v825_v39  ;;  %v3182_v40 = vor.u32 %v2138_v62, %v1794_v8  ;;  %v3184_v58 = vor.u32 %v2136_v61, %v1796_v63 }
  0xfd   :  { %3570 = vst [vmem:[#allocation27_spill] sm:$0xff] %v3156_v59  ;;  %v3186_v59 = vor.u32 %v2139_v37, %v1802_v6 }
  0xfe   :  { %3571 = vst [vmem:[#allocation28_spill] sm:$0xff] %v3182_v40 }
  0xff   :  { %3572 = vst [vmem:[#allocation29_spill] sm:$0xff] %v3184_v58 }
 0x100   :  { %v1002_v19 = vpop.f32.mrf.mxu2  ;;  %v827_v39 = vpop.f32.mrf.mxu0  ;;  %3573 = vst [vmem:[#allocation30_spill] sm:$0xff] %v3186_v59 }
 0x101   :  { %v1003_v11 = vadd.f32 %v1002_v19, %v914_v17  ;;  %v1091_v30 = vpop.f32.mrf.mxu3  ;;  %v828_v7 = vadd.f32 %v827_v39, %v2834_v29  ;;  %v916_v43 = vpop.f32.mrf.mxu1  ;;  %v1818_v19 = vld [vmem:[%s3520_s0 + $0x1e8] sm:$0xf]  ;;  %v1820_v39 = vld [vmem:[%s3520_s0 + $0x1f8] sm:$0xf0] }
 0x103   :  { %v3191_v41 = vadd.f32 %v1091_v30, %v1003_v11  ;;  %v917_v4 = vadd.f32 %v916_v43, %v828_v7  ;;  %866 = vmatmul.bf16.gmra.mxu0 %v3182_v40  ;;  %v1810_v43 = vld [vmem:[%s3520_s0 + $0x1e0] sm:$0xf]  ;;  %v2142_v7 = vld [vmem:[%s3520_s0 + $0x1ec] sm:$0xf0]  ;;  %v2143_v11 = vld [vmem:[%s3520_s0 + $0x1f4] sm:$0xf0] }
 0x104   :  { %955 = vmatmul.bf16.gmra.mxu1 %v3184_v58  ;;  %v2141_v30 = vld [vmem:[%s3520_s0 + $0x1ec] sm:$0xf] }
 0x105   :  { %3575 = vst [vmem:[#allocation32_spill] sm:$0xff] %v3191_v41  ;;  %1044 = vmatmul.bf16.gmra.mxu2 %v3186_v59  ;;  %v3231_v58 = vor.u32 %v2141_v30, %v1820_v39 }
 0x106   :  { %1133 = vmatmul.bf16.gmra.mxu3 %v3189_v16 }
 0x107   :  { %3577 = vst [vmem:[#allocation34_spill] sm:$0xff] %v3231_v58 }
 0x108   :  { %v1005_v17 = vpop.f32.mrf.mxu2  ;;  %v829_v61 = vpop.f32.mrf.mxu0 }
 0x109   :  { %v1006_v8 = vadd.f32 %v1005_v17, %v917_v4  ;;  %v1094_v62 = vpop.f32.mrf.mxu3  ;;  %v830_v63 = vadd.f32 %v829_v61, %v2834_v29  ;;  %v918_v6 = vpop.f32.mrf.mxu1  ;;  %v2140_v4 = vld [vmem:[%s3520_s0 + $0x1e4] sm:$0xf] }
 0x10b   :  { %v3198_v37 = vadd.f32 %v1094_v62, %v1006_v8  ;;  %v919_v36 = vadd.f32 %v918_v6, %v830_v63  ;;  %v3224_v8 = vor.u32 %v2142_v7, %v1810_v43  ;;  %v3226_v6 = vor.u32 %v2140_v4, %v1812_v38 }
 0x10d   :  { %3576 = vst [vmem:[#allocation33_spill] sm:$0xff] %v3198_v37  ;;  %v3228_v37 = vor.u32 %v2143_v11, %v1818_v19 }
 0x110   :  { %v1007_v17 = vpop.f32.mrf.mxu2  ;;  %v832_v63 = vpop.f32.mrf.mxu0 }
 0x111   :  { %v1008_v62 = vadd.f32 %v1007_v17, %v919_v36  ;;  %v1096_v61 = vpop.f32.mrf.mxu3  ;;  %v833_v16 = vadd.f32 %v832_v63, %v2834_v29  ;;  %v921_v59 = vpop.f32.mrf.mxu1 }
 0x113   :  { %v3233_v41 = vadd.f32 %v1096_v61, %v1008_v62  ;;  %v922_v40 = vadd.f32 %v921_v59, %v833_v16  ;;  %871 = vmatmul.bf16.gmra.mxu0 %v3224_v8 }
 0x114   :  { %960 = vmatmul.bf16.gmra.mxu1 %v3226_v6 }
 0x115   :  { %1049 = vmatmul.bf16.gmra.mxu2 %v3228_v37 }
 0x116   :  { %1138 = vmatmul.bf16.gmra.mxu3 %v3231_v58 }
 0x118   :  { %v1010_v36 = vpop.f32.mrf.mxu2  ;;  %v834_v4 = vpop.f32.mrf.mxu0 }
 0x119   :  { %v1011_v43 = vadd.f32 %v1010_v36, %v922_v40  ;;  %v1099_v7 = vpop.f32.mrf.mxu3  ;;  %v835_v38 = vadd.f32 %v834_v4, %v2834_v29  ;;  %v923_v19 = vpop.f32.mrf.mxu1 }
 0x11b   :  { %v3240_v11 = vadd.f32 %v1099_v7, %v1011_v43  ;;  %v924_v30 = vadd.f32 %v923_v19, %v835_v38 }
 0x120   :  { %v1012_v39 = vpop.f32.mrf.mxu2  ;;  %v837_v17 = vpop.f32.mrf.mxu0 }
 0x121   :  { %v1013_v16 = vadd.f32 %v1012_v39, %v924_v30  ;;  %v1101_v59 = vpop.f32.mrf.mxu3  ;;  %v838_v62 = vadd.f32 %v837_v17, %v2834_v29  ;;  %v926_v61 = vpop.f32.mrf.mxu1 }
 0x123   :  { %v3243_v63 = vadd.f32 %v1101_v59, %v1013_v16  ;;  %v927_v58 = vadd.f32 %v926_v61, %v838_v62  ;;  %1152 = vmatmul.bf16.vlgmr.msrb.gmra.mxu0 %v2462_v47 }
 0x124   :  { %1241 = vmatmul.bf16.vlgmr.msrb.gmra.mxu1 %v2470_v51 }
 0x125   :  { %1330 = vmatmul.bf16.vlgmr.msrb.gmra.mxu2 %v2472_v52 }
 0x126   :  { %1419 = vmatmul.bf16.vlgmr.msrb.gmra.mxu3 %v2474_v53 }
 0x128   :  { %v1015_v40 = vpop.f32.mrf.mxu2  ;;  %v839_v7 = vpop.f32.mrf.mxu0 }
 0x129   :  { %v1016_v36 = vadd.f32 %v1015_v40, %v927_v58  ;;  %v1104_v43 = vpop.f32.mrf.mxu3  ;;  %v840_v4 = vadd.f32 %v839_v7, %v2834_v29  ;;  %v928_v38 = vpop.f32.mrf.mxu1 }
 0x12b   :  { %v3250_v19 = vadd.f32 %v1104_v43, %v1016_v36  ;;  %v929_v30 = vadd.f32 %v928_v38, %v840_v4 }
 0x130   :  { %v1017_v39 = vpop.f32.mrf.mxu2  ;;  %v842_v47 = vpop.f32.mrf.mxu0 }
 0x131   :  { %v1018_v16 = vadd.f32 %v1017_v39, %v929_v30  ;;  %v1106_v59 = vpop.f32.mrf.mxu3  ;;  %v843_v51 = vadd.f32 %v842_v47, %v2834_v29  ;;  %v931_v17 = vpop.f32.mrf.mxu1 }
 0x133   :  { %v3253_v52 = vadd.f32 %v1106_v59, %v1018_v16  ;;  %v932_v53 = vadd.f32 %v931_v17, %v843_v51  ;;  %1157 = vmatmul.bf16.gmra.mxu0 %v2528_v12 }
 0x134   :  { %1246 = vmatmul.bf16.gmra.mxu1 %v2530_v13 }
 0x135   :  { %1335 = vmatmul.bf16.gmra.mxu2 %v2532_v14 }
 0x136   :  { %1424 = vmatmul.bf16.gmra.mxu3 %v2534_v15 }
 0x138   :  { %v1020_v58 = vpop.f32.mrf.mxu2  ;;  %v844_v40 = vpop.f32.mrf.mxu0 }
 0x139   :  { %v1021_v62 = vadd.f32 %v1020_v58, %v932_v53  ;;  %v1109_v61 = vpop.f32.mrf.mxu3  ;;  %v845_v36 = vadd.f32 %v844_v40, %v2834_v29  ;;  %v933_v43 = vpop.f32.mrf.mxu1 }
 0x13b   :  { %v3260_v7 = vadd.f32 %v1109_v61, %v1021_v62  ;;  %v934_v4 = vadd.f32 %v933_v43, %v845_v36 }
 0x140   :  { %v1022_v38 = vpop.f32.mrf.mxu2  ;;  %v847_v12 = vpop.f32.mrf.mxu0 }
 0x141   :  { %v1023_v30 = vadd.f32 %v1022_v38, %v934_v4  ;;  %v1111_v39 = vpop.f32.mrf.mxu3  ;;  %v848_v13 = vadd.f32 %v847_v12, %v2834_v29  ;;  %v936_v16 = vpop.f32.mrf.mxu1 }
 0x143   :  { %v3263_v14 = vadd.f32 %v1111_v39, %v1023_v30  ;;  %v937_v15 = vadd.f32 %v936_v16, %v848_v13  ;;  %1162 = vmatmul.bf16.gmra.mxu0 %v2564_v24 }
 0x144   :  { %1251 = vmatmul.bf16.gmra.mxu1 %v2566_v25 }
 0x145   :  { %1340 = vmatmul.bf16.gmra.mxu2 %v2568_v26 }
 0x146   :  { %1429 = vmatmul.bf16.gmra.mxu3 %v2570_v27 }
 0x148   :  { %v1025_v59 = vpop.f32.mrf.mxu2  ;;  %v849_v17 = vpop.f32.mrf.mxu0 }
 0x149   :  { %v1026_v47 = vadd.f32 %v1025_v59, %v937_v15  ;;  %v1114_v51 = vpop.f32.mrf.mxu3  ;;  %v850_v53 = vadd.f32 %v849_v17, %v2834_v29  ;;  %v938_v58 = vpop.f32.mrf.mxu1 }
 0x14b   :  { %v3270_v62 = vadd.f32 %v1114_v51, %v1026_v47  ;;  %v939_v61 = vadd.f32 %v938_v58, %v850_v53 }
 0x150   :  { %v1027_v40 = vpop.f32.mrf.mxu2  ;;  %v852_v24 = vpop.f32.mrf.mxu0 }
 0x151   :  { %v1028_v36 = vadd.f32 %v1027_v40, %v939_v61  ;;  %v1116_v43 = vpop.f32.mrf.mxu3  ;;  %v853_v25 = vadd.f32 %v852_v24, %v2834_v29  ;;  %v941_v4 = vpop.f32.mrf.mxu1 }
 0x153   :  { %v3273_v26 = vadd.f32 %v1116_v43, %v1028_v36  ;;  %v942_v27 = vadd.f32 %v941_v4, %v853_v25  ;;  %1167 = vmatmul.bf16.gmra.mxu0 %v2624_v49 }
 0x154   :  { %1256 = vmatmul.bf16.gmra.mxu1 %v2626_v50 }
 0x155   :  { %1345 = vmatmul.bf16.gmra.mxu2 %v2628_v54 }
 0x156   :  { %1434 = vmatmul.bf16.gmra.mxu3 %v2630_v55 }
 0x158   :  { %v1030_v38 = vpop.f32.mrf.mxu2  ;;  %v854_v12 = vpop.f32.mrf.mxu0 }
 0x159   :  { %v1031_v30 = vadd.f32 %v1030_v38, %v942_v27  ;;  %v1119_v39 = vpop.f32.mrf.mxu3  ;;  %v855_v13 = vadd.f32 %v854_v12, %v2834_v29  ;;  %v943_v16 = vpop.f32.mrf.mxu1 }
 0x15b   :  { %v3280_v15 = vadd.f32 %v1119_v39, %v1031_v30  ;;  %v944_v59 = vadd.f32 %v943_v16, %v855_v13 }
 0x160   :  { %v1032_v47 = vpop.f32.mrf.mxu2  ;;  %v857_v49 = vpop.f32.mrf.mxu0 }
 0x161   :  { %v1033_v51 = vadd.f32 %v1032_v47, %v944_v59  ;;  %v1121_v17 = vpop.f32.mrf.mxu3  ;;  %v858_v50 = vadd.f32 %v857_v49, %v2834_v29  ;;  %v946_v53 = vpop.f32.mrf.mxu1 }
 0x163   :  { %v3283_v54 = vadd.f32 %v1121_v17, %v1033_v51  ;;  %v947_v55 = vadd.f32 %v946_v53, %v858_v50  ;;  %1172 = vmatmul.bf16.gmra.mxu0 %v2660_v0 }
 0x164   :  { %1261 = vmatmul.bf16.gmra.mxu1 %v2662_v1 }
 0x165   :  { %1350 = vmatmul.bf16.gmra.mxu2 %v2664_v2 }
 0x166   :  { %1439 = vmatmul.bf16.gmra.mxu3 %v2666_v3 }
 0x168   :  { %v1035_v58 = vpop.f32.mrf.mxu2  ;;  %v859_v36 = vpop.f32.mrf.mxu0 }
 0x169   :  { %v1036_v61 = vadd.f32 %v1035_v58, %v947_v55  ;;  %v1124_v40 = vpop.f32.mrf.mxu3  ;;  %v860_v43 = vadd.f32 %v859_v36, %v2834_v29  ;;  %v948_v24 = vpop.f32.mrf.mxu1 }
 0x16b   :  { %v3290_v25 = vadd.f32 %v1124_v40, %v1036_v61  ;;  %v949_v4 = vadd.f32 %v948_v24, %v860_v43 }
 0x170   :  { %v1037_v27 = vpop.f32.mrf.mxu2  ;;  %v862_v0 = vpop.f32.mrf.mxu0 }
 0x171   :  { %v1038_v38 = vadd.f32 %v1037_v27, %v949_v4  ;;  %v1126_v30 = vpop.f32.mrf.mxu3  ;;  %v863_v1 = vadd.f32 %v862_v0, %v2834_v29  ;;  %v951_v39 = vpop.f32.mrf.mxu1 }
 0x173   :  { %v3293_v2 = vadd.f32 %v1126_v30, %v1038_v38  ;;  %v952_v3 = vadd.f32 %v951_v39, %v863_v1  ;;  %1177 = vmatmul.bf16.gmra.mxu0 %v2720_v32 }
 0x174   :  { %1266 = vmatmul.bf16.gmra.mxu1 %v2722_v33 }
 0x175   :  { %1355 = vmatmul.bf16.gmra.mxu2 %v2724_v34 }
 0x176   :  { %1444 = vmatmul.bf16.gmra.mxu3 %v2726_v35 }
 0x178   :  { %v1040_v12 = vpop.f32.mrf.mxu2  ;;  %v864_v59 = vpop.f32.mrf.mxu0 }
 0x179   :  { %v1041_v13 = vadd.f32 %v1040_v12, %v952_v3  ;;  %v1129_v16 = vpop.f32.mrf.mxu3  ;;  %v865_v47 = vadd.f32 %v864_v59, %v2834_v29  ;;  %v953_v51 = vpop.f32.mrf.mxu1 }
 0x17b   :  { %v3300_v17 = vadd.f32 %v1129_v16, %v1041_v13  ;;  %v954_v49 = vadd.f32 %v953_v51, %v865_v47 }
 0x180   :  { %v1042_v50 = vpop.f32.mrf.mxu2  ;;  %v867_v32 = vpop.f32.mrf.mxu0 }
 0x181   :  { %v1043_v53 = vadd.f32 %v1042_v50, %v954_v49  ;;  %v1131_v55 = vpop.f32.mrf.mxu3  ;;  %v868_v33 = vadd.f32 %v867_v32, %v2834_v29  ;;  %v956_v58 = vpop.f32.mrf.mxu1  ;;  %v3323_v50 = vperm.slane %v2831_v28, 1 }
 0x183   :  { %v3303_v34 = vadd.f32 %v1131_v55, %v1043_v53  ;;  %v957_v35 = vadd.f32 %v956_v58, %v868_v33  ;;  %1182 = vmatmul.bf16.gmra.mxu0 %v2756_v44 }
 0x184   :  { %1271 = vmatmul.bf16.gmra.mxu1 %v2758_v45 }
 0x185   :  { %1360 = vmatmul.bf16.gmra.mxu2 %v2760_v46 }
 0x186   :  { %1449 = vmatmul.bf16.gmra.mxu3 %v2762_v48 }
 0x188   :  { %v1045_v61 = vpop.f32.mrf.mxu2  ;;  %v869_v43 = vpop.f32.mrf.mxu0 }
 0x189   :  { %v1046_v40 = vadd.f32 %v1045_v61, %v957_v35  ;;  %v1134_v36 = vpop.f32.mrf.mxu3  ;;  %v870_v24 = vadd.f32 %v869_v43, %v2834_v29  ;;  %v958_v4 = vpop.f32.mrf.mxu1 }
 0x18b   :  { %v3310_v27 = vadd.f32 %v1134_v36, %v1046_v40  ;;  %v959_v38 = vadd.f32 %v958_v4, %v870_v24 }
 0x190   :  { %v1047_v30 = vpop.f32.mrf.mxu2  ;;  %v872_v44 = vpop.f32.mrf.mxu0 }
 0x191   :  { %v1048_v0 = vadd.f32 %v1047_v30, %v959_v38  ;;  %v1136_v1 = vpop.f32.mrf.mxu3  ;;  %v873_v45 = vadd.f32 %v872_v44, %v2834_v29  ;;  %v961_v39 = vpop.f32.mrf.mxu1 }
 0x193   :  { %v3313_v46 = vadd.f32 %v1136_v1, %v1048_v0  ;;  %v962_v48 = vadd.f32 %v961_v39, %v873_v45  ;;  %1187 = vmatmul.bf16.gmra.mxu0 %v2816_v20 }
 0x194   :  { %1276 = vmatmul.bf16.gmra.mxu1 %v2818_v21 }
 0x195   :  { %1365 = vmatmul.bf16.gmra.mxu2 %v2820_v22 }
 0x196   :  { %1454 = vmatmul.bf16.gmra.mxu3 %v2822_v23 }
 0x198   :  { %v1050_v3 = vpop.f32.mrf.mxu2  ;;  %v874_v16 = vpop.f32.mrf.mxu0 }
 0x199   :  { %v1051_v12 = vadd.f32 %v1050_v3, %v962_v48  ;;  %v1139_v13 = vpop.f32.mrf.mxu3  ;;  %v875_v59 = vadd.f32 %v874_v16, %v2834_v29  ;;  %v963_v47 = vpop.f32.mrf.mxu1 }
 0x19b   :  { %v3320_v51 = vadd.f32 %v1139_v13, %v1051_v12  ;;  %v964_v49 = vadd.f32 %v963_v47, %v875_v59 }
 0x1a0   :  { %v1052_v20 = vpop.f32.mrf.mxu2  ;;  %v1153_v55 = vpop.f32.mrf.mxu0 }
 0x1a1   :  { %v1053_v53 = vadd.f32 %v1052_v20, %v964_v49  ;;  %v1141_v21 = vpop.f32.mrf.mxu3  ;;  %v1154_v22 = vadd.f32 %v1153_v55, %v3323_v50  ;;  %v1242_v23 = vpop.f32.mrf.mxu1  ;;  %v3581_v55 = vld [vmem:[#allocation8_spill] sm:$0xff] }
 0x1a3   :  { %v3326_v32 = vadd.f32 %v1141_v21, %v1053_v53  ;;  %1192 = vmatmul.bf16.gmra.mxu0 %v2860_v42  ;;  %v1243_v33 = vadd.f32 %v1242_v23, %v1154_v22  ;;  %v3580_v21 = vld [vmem:[#allocation4_spill] sm:$0xff] }
 0x1a4   :  { %1281 = vmatmul.bf16.gmra.mxu1 %v2862_v56 }
 0x1a5   :  { %1370 = vmatmul.bf16.gmra.mxu2 %v2864_v57 }
 0x1a6   :  { %1459 = vmatmul.bf16.gmra.mxu3 %v2867_v60 }
 0x1a8   :  { %v1331_v28 = vpop.f32.mrf.mxu2  ;;  %v1155_v35 = vpop.f32.mrf.mxu0 }
 0x1a9   :  { %v1332_v29 = vadd.f32 %v1331_v28, %v1243_v33  ;;  %v1420_v58 = vpop.f32.mrf.mxu3  ;;  %v1244_v61 = vpop.f32.mrf.mxu1  ;;  %v1156_v36 = vadd.f32 %v1155_v35, %v3323_v50  ;;  %v3582_v33 = vld [vmem:[#allocation5_spill] sm:$0xff]  ;;  %v3583_v28 = vld [vmem:[#allocation6_spill] sm:$0xff] }
 0x1ab   :  { %v1421_v40 = vadd.f32 %v1420_v58, %v1332_v29  ;;  %v1245_v42 = vadd.f32 %v1244_v61, %v1156_v36  ;;  %v3584_v29 = vld [vmem:[#allocation7_spill] sm:$0xff] }
 0x1ad   :  { %v1500_v43 = vpack.c.bf16 %v1421_v40, %v2892_v31  ;;  %v3578_v31 = vld [vmem:[#allocation2_spill] sm:$0xff] }
 0x1af   :  { %1532 = vst [vmem:[%s3522_s3] sm:$0xff] %v1500_v43 }
 0x1b0   :  { %v1333_v56 = vpop.f32.mrf.mxu2  ;;  %v1158_v4 = vpop.f32.mrf.mxu0 }
 0x1b1   :  { %v1334_v24 = vadd.f32 %v1333_v56, %v1245_v42  ;;  %v1422_v57 = vpop.f32.mrf.mxu3  ;;  %v1159_v60 = vadd.f32 %v1158_v4, %v3323_v50  ;;  %v1247_v38 = vpop.f32.mrf.mxu1  ;;  %v3585_v56 = vld [vmem:[#allocation9_spill] sm:$0xff] }
 0x1b3   :  { %v1423_v30 = vadd.f32 %v1422_v57, %v1334_v24  ;;  %1197 = vmatmul.bf16.gmra.mxu0 %v2924_v5  ;;  %v1248_v1 = vadd.f32 %v1247_v38, %v1159_v60 }
 0x1b4   :  { %1286 = vmatmul.bf16.gmra.mxu1 %v2926_v9 }
 0x1b5   :  { %v1501_v0 = vpack.c.bf16 %v1423_v30, %v2933_v18  ;;  %1375 = vmatmul.bf16.gmra.mxu2 %v2928_v10  ;;  %v3579_v18 = vld [vmem:[#allocation3_spill] sm:$0xff] }
 0x1b6   :  { %1464 = vmatmul.bf16.gmra.mxu3 %v3578_v31 }
 0x1b7   :  { %1533 = vst [vmem:[%s3522_s3 + $0x8] sm:$0xff] %v1501_v0 }
 0x1b8   :  { %v1336_v44 = vpop.f32.mrf.mxu2  ;;  %v1160_v48 = vpop.f32.mrf.mxu0 }
 0x1b9   :  { %v1337_v45 = vadd.f32 %v1336_v44, %v1248_v1  ;;  %v1425_v39 = vpop.f32.mrf.mxu3  ;;  %v1249_v3 = vpop.f32.mrf.mxu1  ;;  %v1161_v5 = vadd.f32 %v1160_v48, %v3323_v50  ;;  %v3586_v44 = vld [vmem:[#allocation10_spill] sm:$0xff] }
 0x1bb   :  { %v1426_v12 = vadd.f32 %v1425_v39, %v1337_v45  ;;  %v1250_v9 = vadd.f32 %v1249_v3, %v1161_v5  ;;  %v3587_v45 = vld [vmem:[#allocation14_spill] sm:$0xff]  ;;  %v3588_v3 = vld [vmem:[#allocation11_spill] sm:$0xff]  ;;  %v3590_v5 = vld [vmem:[#allocation13_spill] sm:$0xff] }
 0x1bd   :  { %v1502_v13 = vpack.c.bf16 %v1426_v12, %v3579_v18  ;;  %v3589_v12 = vld [vmem:[#allocation12_spill] sm:$0xff] }
 0x1bf   :  { %1534 = vst [vmem:[%s3522_s3 + $0x10] sm:$0xff] %v1502_v13 }
 0x1c0   :  { %v1338_v10 = vpop.f32.mrf.mxu2  ;;  %v1163_v47 = vpop.f32.mrf.mxu0 }
 0x1c1   :  { %v1339_v16 = vadd.f32 %v1338_v10, %v1250_v9  ;;  %v1427_v59 = vpop.f32.mrf.mxu3  ;;  %v1164_v49 = vadd.f32 %v1163_v47, %v3323_v50  ;;  %v1252_v20 = vpop.f32.mrf.mxu1 }
 0x1c3   :  { %v1428_v53 = vadd.f32 %v1427_v59, %v1339_v16  ;;  %1202 = vmatmul.bf16.gmra.mxu0 %v3580_v21  ;;  %v1253_v23 = vadd.f32 %v1252_v20, %v1164_v49  ;;  %v3591_v49 = vld [vmem:[#allocation15_spill] sm:$0xff] }
 0x1c4   :  { %1291 = vmatmul.bf16.gmra.mxu1 %v3582_v33 }
 0x1c5   :  { %v1503_v22 = vpack.c.bf16 %v1428_v53, %v3581_v55  ;;  %1380 = vmatmul.bf16.gmra.mxu2 %v3583_v28 }
 0x1c6   :  { %1469 = vmatmul.bf16.gmra.mxu3 %v3584_v29 }
 0x1c7   :  { %1535 = vst [vmem:[%s3522_s3 + $0x18] sm:$0xff] %v1503_v22 }
 0x1c8   :  { %v1341_v58 = vpop.f32.mrf.mxu2  ;;  %v1165_v40 = vpop.f32.mrf.mxu0 }
 0x1c9   :  { %v1342_v35 = vadd.f32 %v1341_v58, %v1253_v23  ;;  %v1430_v61 = vpop.f32.mrf.mxu3  ;;  %v1254_v36 = vpop.f32.mrf.mxu1  ;;  %v1166_v42 = vadd.f32 %v1165_v40, %v3323_v50  ;;  %v3592_v58 = vld [vmem:[#allocation16_spill] sm:$0xff] }
 0x1cb   :  { %v1431_v43 = vadd.f32 %v1430_v61, %v1342_v35  ;;  %v1255_v57 = vadd.f32 %v1254_v36, %v1166_v42  ;;  %v3593_v35 = vld [vmem:[#allocation20_spill] sm:$0xff]  ;;  %v3594_v36 = vld [vmem:[#allocation17_spill] sm:$0xff]  ;;  %v3596_v42 = vld [vmem:[#allocation19_spill] sm:$0xff] }
 0x1cd   :  { %v1504_v24 = vpack.c.bf16 %v1431_v43, %v3585_v56  ;;  %v3595_v43 = vld [vmem:[#allocation18_spill] sm:$0xff] }
 0x1cf   :  { %1536 = vst [vmem:[%s3522_s3 + $0x20] sm:$0xff] %v1504_v24 }
 0x1d0   :  { %v1343_v4 = vpop.f32.mrf.mxu2  ;;  %v1168_v30 = vpop.f32.mrf.mxu0 }
 0x1d1   :  { %v1344_v60 = vadd.f32 %v1343_v4, %v1255_v57  ;;  %v1432_v38 = vpop.f32.mrf.mxu3  ;;  %v1169_v0 = vadd.f32 %v1168_v30, %v3323_v50  ;;  %v1257_v1 = vpop.f32.mrf.mxu1 }
 0x1d3   :  { %v1433_v31 = vadd.f32 %v1432_v38, %v1344_v60  ;;  %1207 = vmatmul.bf16.gmra.mxu0 %v3586_v44  ;;  %v1258_v48 = vadd.f32 %v1257_v1, %v1169_v0  ;;  %v3597_v0 = vld [vmem:[#allocation21_spill] sm:$0xff] }
 0x1d4   :  { %1296 = vmatmul.bf16.gmra.mxu1 %v3588_v3 }
 0x1d5   :  { %v1505_v39 = vpack.c.bf16 %v1433_v31, %v3587_v45  ;;  %1385 = vmatmul.bf16.gmra.mxu2 %v3589_v12 }
 0x1d6   :  { %1474 = vmatmul.bf16.gmra.mxu3 %v3590_v5 }
 0x1d7   :  { %1537 = vst [vmem:[%s3522_s3 + $0x28] sm:$0xff] %v1505_v39 }
 0x1d8   :  { %v1346_v18 = vpop.f32.mrf.mxu2  ;;  %v1170_v10 = vpop.f32.mrf.mxu0 }
 0x1d9   :  { %v1347_v13 = vadd.f32 %v1346_v18, %v1258_v48  ;;  %v1435_v9 = vpop.f32.mrf.mxu3  ;;  %v1259_v16 = vpop.f32.mrf.mxu1  ;;  %v1171_v47 = vadd.f32 %v1170_v10, %v3323_v50  ;;  %v3598_v18 = vld [vmem:[#allocation22_spill] sm:$0xff] }
 0x1db   :  { %v1436_v59 = vadd.f32 %v1435_v9, %v1347_v13  ;;  %v1260_v53 = vadd.f32 %v1259_v16, %v1171_v47  ;;  %v3599_v13 = vld [vmem:[#allocation26_spill] sm:$0xff]  ;;  %v3600_v16 = vld [vmem:[#allocation23_spill] sm:$0xff]  ;;  %v3602_v47 = vld [vmem:[#allocation25_spill] sm:$0xff] }
 0x1dd   :  { %v1506_v20 = vpack.c.bf16 %v1436_v59, %v3591_v49  ;;  %v3601_v59 = vld [vmem:[#allocation24_spill] sm:$0xff] }
 0x1df   :  { %1538 = vst [vmem:[%s3522_s3 + $0x30] sm:$0xff] %v1506_v20 }
 0x1e0   :  { %v1348_v21 = vpop.f32.mrf.mxu2  ;;  %v1173_v23 = vpop.f32.mrf.mxu0 }
 0x1e1   :  { %v1349_v55 = vadd.f32 %v1348_v21, %v1260_v53  ;;  %v1437_v22 = vpop.f32.mrf.mxu3  ;;  %v1174_v33 = vadd.f32 %v1173_v23, %v3323_v50  ;;  %v1262_v28 = vpop.f32.mrf.mxu1 }
 0x1e3   :  { %v1438_v29 = vadd.f32 %v1437_v22, %v1349_v55  ;;  %1212 = vmatmul.bf16.gmra.mxu0 %v3592_v58  ;;  %v1263_v40 = vadd.f32 %v1262_v28, %v1174_v33  ;;  %v3603_v33 = vld [vmem:[#allocation27_spill] sm:$0xff] }
 0x1e4   :  { %1301 = vmatmul.bf16.gmra.mxu1 %v3594_v36 }
 0x1e5   :  { %v1507_v61 = vpack.c.bf16 %v1438_v29, %v3593_v35  ;;  %1390 = vmatmul.bf16.gmra.mxu2 %v3595_v43 }
 0x1e6   :  { %1479 = vmatmul.bf16.gmra.mxu3 %v3596_v42 }
 0x1e7   :  { %1539 = vst [vmem:[%s3522_s3 + $0x38] sm:$0xff] %v1507_v61 }
 0x1e8   :  { %v1351_v56 = vpop.f32.mrf.mxu2  ;;  %v1175_v4 = vpop.f32.mrf.mxu0 }
 0x1e9   :  { %v1352_v24 = vadd.f32 %v1351_v56, %v1263_v40  ;;  %v1440_v57 = vpop.f32.mrf.mxu3  ;;  %v1264_v60 = vpop.f32.mrf.mxu1  ;;  %v1176_v30 = vadd.f32 %v1175_v4, %v3323_v50  ;;  %v3604_v56 = vld [vmem:[#allocation28_spill] sm:$0xff] }
 0x1eb   :  { %v1441_v38 = vadd.f32 %v1440_v57, %v1352_v24  ;;  %v1265_v31 = vadd.f32 %v1264_v60, %v1176_v30  ;;  %v3605_v24 = vld [vmem:[#allocation32_spill] sm:$0xff]  ;;  %v3606_v60 = vld [vmem:[#allocation29_spill] sm:$0xff]  ;;  %v3608_v30 = vld [vmem:[#allocation31_spill] sm:$0xff] }
 0x1ed   :  { %v1508_v1 = vpack.c.bf16 %v1441_v38, %v3597_v0  ;;  %v3607_v38 = vld [vmem:[#allocation30_spill] sm:$0xff] }
 0x1ef   :  { %1540 = vst [vmem:[%s3522_s3 + $0x40] sm:$0xff] %v1508_v1 }
 0x1f0   :  { %v1353_v44 = vpop.f32.mrf.mxu2  ;;  %v1178_v48 = vpop.f32.mrf.mxu0 }
 0x1f1   :  { %v1354_v45 = vadd.f32 %v1353_v44, %v1265_v31  ;;  %v1442_v39 = vpop.f32.mrf.mxu3  ;;  %v1179_v3 = vadd.f32 %v1178_v48, %v3323_v50  ;;  %v1267_v12 = vpop.f32.mrf.mxu1 }
 0x1f3   :  { %v1443_v5 = vadd.f32 %v1442_v39, %v1354_v45  ;;  %1217 = vmatmul.bf16.gmra.mxu0 %v3598_v18  ;;  %v1268_v10 = vadd.f32 %v1267_v12, %v1179_v3  ;;  %v3609_v3 = vld [vmem:[#allocation33_spill] sm:$0xff] }
 0x1f4   :  { %1306 = vmatmul.bf16.gmra.mxu1 %v3600_v16 }
 0x1f5   :  { %v1509_v9 = vpack.c.bf16 %v1443_v5, %v3599_v13  ;;  %1395 = vmatmul.bf16.gmra.mxu2 %v3601_v59 }
 0x1f6   :  { %1484 = vmatmul.bf16.gmra.mxu3 %v3602_v47 }
 0x1f7   :  { %1541 = vst [vmem:[%s3522_s3 + $0x48] sm:$0xff] %v1509_v9 }
 0x1f8   :  { %v1356_v49 = vpop.f32.mrf.mxu2  ;;  %v1180_v21 = vpop.f32.mrf.mxu0 }
 0x1f9   :  { %v1357_v20 = vadd.f32 %v1356_v49, %v1268_v10  ;;  %v1445_v53 = vpop.f32.mrf.mxu3  ;;  %v1269_v55 = vpop.f32.mrf.mxu1  ;;  %v1181_v23 = vadd.f32 %v1180_v21, %v3323_v50 }
 0x1fb   :  { %v1446_v22 = vadd.f32 %v1445_v53, %v1357_v20  ;;  %v1270_v29 = vadd.f32 %v1269_v55, %v1181_v23  ;;  %v3610_v53 = vld [vmem:[#allocation34_spill] sm:$0xff] }
 0x1fd   :  { %v1510_v28 = vpack.c.bf16 %v1446_v22, %v3603_v33 }
 0x1ff   :  { %1542 = vst [vmem:[%s3522_s3 + $0x50] sm:$0xff] %v1510_v28 }
 0x200   :  { %v1358_v58 = vpop.f32.mrf.mxu2  ;;  %v1183_v40 = vpop.f32.mrf.mxu0 }
 0x201   :  { %v1359_v35 = vadd.f32 %v1358_v58, %v1270_v29  ;;  %v1447_v61 = vpop.f32.mrf.mxu3  ;;  %v1184_v36 = vadd.f32 %v1183_v40, %v3323_v50  ;;  %v1272_v43 = vpop.f32.mrf.mxu1 }
 0x203   :  { %v1448_v42 = vadd.f32 %v1447_v61, %v1359_v35  ;;  %1222 = vmatmul.bf16.gmra.mxu0 %v3604_v56  ;;  %v1273_v4 = vadd.f32 %v1272_v43, %v1184_v36 }
 0x204   :  { %1311 = vmatmul.bf16.gmra.mxu1 %v3606_v60 }
 0x205   :  { %v1511_v57 = vpack.c.bf16 %v1448_v42, %v3605_v24  ;;  %1400 = vmatmul.bf16.gmra.mxu2 %v3607_v38 }
 0x206   :  { %1489 = vmatmul.bf16.gmra.mxu3 %v3608_v30 }
 0x207   :  { %1543 = vst [vmem:[%s3522_s3 + $0x58] sm:$0xff] %v1511_v57 }
 0x208   :  { %v1361_v0 = vpop.f32.mrf.mxu2  ;;  %v1185_v44 = vpop.f32.mrf.mxu0 }
 0x209   :  { %v1362_v1 = vadd.f32 %v1361_v0, %v1273_v4  ;;  %v1450_v31 = vpop.f32.mrf.mxu3  ;;  %v1274_v45 = vpop.f32.mrf.mxu1  ;;  %v1186_v48 = vadd.f32 %v1185_v44, %v3323_v50 }
 0x20b   :  { %v1451_v39 = vadd.f32 %v1450_v31, %v1362_v1  ;;  %v1275_v5 = vadd.f32 %v1274_v45, %v1186_v48 }
 0x20d   :  { %v1512_v12 = vpack.c.bf16 %v1451_v39, %v3609_v3 }
 0x20f   :  { %1544 = vst [vmem:[%s3522_s3 + $0x60] sm:$0xff] %v1512_v12 }
 0x210   :  { %v1363_v18 = vpop.f32.mrf.mxu2  ;;  %v1188_v10 = vpop.f32.mrf.mxu0 }
 0x211   :  { %v1364_v13 = vadd.f32 %v1363_v18, %v1275_v5  ;;  %v1452_v9 = vpop.f32.mrf.mxu3  ;;  %v1189_v16 = vadd.f32 %v1188_v10, %v3323_v50  ;;  %v1277_v59 = vpop.f32.mrf.mxu1 }
 0x213   :  { %v1453_v47 = vadd.f32 %v1452_v9, %v1364_v13  ;;  %1227 = vmatmul.bf16.gmra.mxu0 %v3224_v8  ;;  %v1278_v20 = vadd.f32 %v1277_v59, %v1189_v16 }
 0x214   :  { %1316 = vmatmul.bf16.gmra.mxu1 %v3226_v6 }
 0x215   :  { %v1513_v49 = vpack.c.bf16 %v1453_v47, %v3233_v41  ;;  %1405 = vmatmul.bf16.gmra.mxu2 %v3228_v37 }
 0x216   :  { %1494 = vmatmul.bf16.gmra.mxu3 %v3610_v53 }
 0x217   :  { %1545 = vst [vmem:[%s3522_s3 + $0x68] sm:$0xff] %v1513_v49 }
 0x218   :  { %v1366_v21 = vpop.f32.mrf.mxu2  ;;  %v1190_v23 = vpop.f32.mrf.mxu0 }
 0x219   :  { %v1367_v55 = vadd.f32 %v1366_v21, %v1278_v20  ;;  %v1455_v22 = vpop.f32.mrf.mxu3  ;;  %v1279_v33 = vpop.f32.mrf.mxu1  ;;  %v1191_v8 = vadd.f32 %v1190_v23, %v3323_v50 }
 0x21b   :  { %v1456_v28 = vadd.f32 %v1455_v22, %v1367_v55  ;;  %v1280_v37 = vadd.f32 %v1279_v33, %v1191_v8 }
 0x21d   :  { %v1514_v41 = vpack.c.bf16 %v1456_v28, %v3240_v11 }
 0x21f   :  { %1546 = vst [vmem:[%s3522_s3 + $0x70] sm:$0xff] %v1514_v41 }
 0x220   :  { %v1368_v6 = vpop.f32.mrf.mxu2  ;;  %v1193_v35 = vpop.f32.mrf.mxu0 }
 0x221   :  { %v1369_v29 = vadd.f32 %v1368_v6, %v1280_v37  ;;  %v1457_v58 = vpop.f32.mrf.mxu3  ;;  %v1194_v61 = vadd.f32 %v1193_v35, %v3323_v50  ;;  %v1282_v40 = vpop.f32.mrf.mxu1 }
 0x223   :  { %v1458_v36 = vadd.f32 %v1457_v58, %v1369_v29  ;;  %v1283_v42 = vadd.f32 %v1282_v40, %v1194_v61 }
 0x225   :  { %v1515_v43 = vpack.c.bf16 %v1458_v36, %v3243_v63 }
 0x227   :  { %1547 = vst [vmem:[%s3522_s3 + $0x78] sm:$0xff] %v1515_v43 }
 0x228   :  { %v1371_v11 = vpop.f32.mrf.mxu2  ;;  %v1195_v57 = vpop.f32.mrf.mxu0 }
 0x229   :  { %v1372_v56 = vadd.f32 %v1371_v11, %v1283_v42  ;;  %v1460_v24 = vpop.f32.mrf.mxu3  ;;  %v1284_v4 = vpop.f32.mrf.mxu1  ;;  %v1196_v38 = vadd.f32 %v1195_v57, %v3323_v50 }
 0x22b   :  { %v1461_v60 = vadd.f32 %v1460_v24, %v1372_v56  ;;  %v1285_v63 = vadd.f32 %v1284_v4, %v1196_v38 }
 0x22d   :  { %v1516_v30 = vpack.c.bf16 %v1461_v60, %v3250_v19 }
 0x22f   :  { %1548 = vst [vmem:[%s3522_s3 + $0x80] sm:$0xff] %v1516_v30 }
 0x230   :  { %v1373_v0 = vpop.f32.mrf.mxu2  ;;  %v1198_v44 = vpop.f32.mrf.mxu0 }
 0x231   :  { %v1374_v1 = vadd.f32 %v1373_v0, %v1285_v63  ;;  %v1462_v31 = vpop.f32.mrf.mxu3  ;;  %v1199_v45 = vadd.f32 %v1198_v44, %v3323_v50  ;;  %v1287_v39 = vpop.f32.mrf.mxu1 }
 0x233   :  { %v1463_v48 = vadd.f32 %v1462_v31, %v1374_v1  ;;  %v1288_v12 = vadd.f32 %v1287_v39, %v1199_v45 }
 0x235   :  { %v1517_v3 = vpack.c.bf16 %v1463_v48, %v3253_v52 }
 0x237   :  { %1549 = vst [vmem:[%s3522_s3 + $0x88] sm:$0xff] %v1517_v3 }
 0x238   :  { %v1376_v19 = vpop.f32.mrf.mxu2  ;;  %v1200_v13 = vpop.f32.mrf.mxu0 }
 0x239   :  { %v1377_v5 = vadd.f32 %v1376_v19, %v1288_v12  ;;  %v1465_v18 = vpop.f32.mrf.mxu3  ;;  %v1289_v9 = vpop.f32.mrf.mxu1  ;;  %v1201_v16 = vadd.f32 %v1200_v13, %v3323_v50 }
 0x23b   :  { %v1466_v10 = vadd.f32 %v1465_v18, %v1377_v5  ;;  %v1290_v52 = vadd.f32 %v1289_v9, %v1201_v16 }
 0x23d   :  { %v1518_v59 = vpack.c.bf16 %v1466_v10, %v3260_v7 }
 0x23f   :  { %1550 = vst [vmem:[%s3522_s3 + $0x90] sm:$0xff] %v1518_v59 }
 0x240   :  { %v1378_v47 = vpop.f32.mrf.mxu2  ;;  %v1203_v53 = vpop.f32.mrf.mxu0 }
 0x241   :  { %v1379_v49 = vadd.f32 %v1378_v47, %v1290_v52  ;;  %v1467_v20 = vpop.f32.mrf.mxu3  ;;  %v1204_v21 = vadd.f32 %v1203_v53, %v3323_v50  ;;  %v1292_v55 = vpop.f32.mrf.mxu1 }
 0x243   :  { %v1468_v22 = vadd.f32 %v1467_v20, %v1379_v49  ;;  %v1293_v33 = vadd.f32 %v1292_v55, %v1204_v21 }
 0x245   :  { %v1519_v23 = vpack.c.bf16 %v1468_v22, %v3263_v14 }
 0x247   :  { %1551 = vst [vmem:[%s3522_s3 + $0x98] sm:$0xff] %v1519_v23 }
 0x248   :  { %v1381_v7 = vpop.f32.mrf.mxu2  ;;  %v1205_v41 = vpop.f32.mrf.mxu0 }
 0x249   :  { %v1382_v28 = vadd.f32 %v1381_v7, %v1293_v33  ;;  %v1470_v8 = vpop.f32.mrf.mxu3  ;;  %v1294_v37 = vpop.f32.mrf.mxu1  ;;  %v1206_v29 = vadd.f32 %v1205_v41, %v3323_v50 }
 0x24b   :  { %v1471_v6 = vadd.f32 %v1470_v8, %v1382_v28  ;;  %v1295_v14 = vadd.f32 %v1294_v37, %v1206_v29 }
 0x24d   :  { %v1520_v58 = vpack.c.bf16 %v1471_v6, %v3270_v62 }
 0x24f   :  { %1552 = vst [vmem:[%s3522_s3 + $0xa0] sm:$0xff] %v1520_v58 }
 0x250   :  { %v1383_v35 = vpop.f32.mrf.mxu2  ;;  %v1208_v36 = vpop.f32.mrf.mxu0 }
 0x251   :  { %v1384_v61 = vadd.f32 %v1383_v35, %v1295_v14  ;;  %v1472_v40 = vpop.f32.mrf.mxu3  ;;  %v1209_v43 = vadd.f32 %v1208_v36, %v3323_v50  ;;  %v1297_v42 = vpop.f32.mrf.mxu1 }
 0x253   :  { %v1473_v11 = vadd.f32 %v1472_v40, %v1384_v61  ;;  %v1298_v24 = vadd.f32 %v1297_v42, %v1209_v43 }
 0x255   :  { %v1521_v56 = vpack.c.bf16 %v1473_v11, %v3273_v26 }
 0x257   :  { %1553 = vst [vmem:[%s3522_s3 + $0xa8] sm:$0xff] %v1521_v56 }
 0x258   :  { %v1386_v62 = vpop.f32.mrf.mxu2  ;;  %v1210_v60 = vpop.f32.mrf.mxu0 }
 0x259   :  { %v1387_v57 = vadd.f32 %v1386_v62, %v1298_v24  ;;  %v1475_v4 = vpop.f32.mrf.mxu3  ;;  %v1299_v38 = vpop.f32.mrf.mxu1  ;;  %v1211_v63 = vadd.f32 %v1210_v60, %v3323_v50 }
 0x25b   :  { %v1476_v30 = vadd.f32 %v1475_v4, %v1387_v57  ;;  %v1300_v26 = vadd.f32 %v1299_v38, %v1211_v63 }
 0x25d   :  { %v1522_v0 = vpack.c.bf16 %v1476_v30, %v3280_v15 }
 0x25f   :  { %1554 = vst [vmem:[%s3522_s3 + $0xb0] sm:$0xff] %v1522_v0 }
 0x260   :  { %v1388_v1 = vpop.f32.mrf.mxu2  ;;  %v1213_v45 = vpop.f32.mrf.mxu0 }
 0x261   :  { %v1389_v31 = vadd.f32 %v1388_v1, %v1300_v26  ;;  %v1477_v44 = vpop.f32.mrf.mxu3  ;;  %v1214_v39 = vadd.f32 %v1213_v45, %v3323_v50  ;;  %v1302_v48 = vpop.f32.mrf.mxu1 }
 0x263   :  { %v1478_v3 = vadd.f32 %v1477_v44, %v1389_v31  ;;  %v1303_v19 = vadd.f32 %v1302_v48, %v1214_v39 }
 0x265   :  { %v1523_v12 = vpack.c.bf16 %v1478_v3, %v3283_v54 }
 0x267   :  { %1555 = vst [vmem:[%s3522_s3 + $0xb8] sm:$0xff] %v1523_v12 }
 0x268   :  { %v1391_v15 = vpop.f32.mrf.mxu2  ;;  %v1215_v13 = vpop.f32.mrf.mxu0 }
 0x269   :  { %v1392_v5 = vadd.f32 %v1391_v15, %v1303_v19  ;;  %v1480_v18 = vpop.f32.mrf.mxu3  ;;  %v1304_v9 = vpop.f32.mrf.mxu1  ;;  %v1216_v16 = vadd.f32 %v1215_v13, %v3323_v50 }
 0x26b   :  { %v1481_v10 = vadd.f32 %v1480_v18, %v1392_v5  ;;  %v1305_v54 = vadd.f32 %v1304_v9, %v1216_v16 }
 0x26d   :  { %v1524_v59 = vpack.c.bf16 %v1481_v10, %v3290_v25 }
 0x26f   :  { %1556 = vst [vmem:[%s3522_s3 + $0xc0] sm:$0xff] %v1524_v59 }
 0x270   :  { %v1393_v52 = vpop.f32.mrf.mxu2  ;;  %v1218_v20 = vpop.f32.mrf.mxu0 }
 0x271   :  { %v1394_v47 = vadd.f32 %v1393_v52, %v1305_v54  ;;  %v1482_v49 = vpop.f32.mrf.mxu3  ;;  %v1219_v53 = vadd.f32 %v1218_v20, %v3323_v50  ;;  %v1307_v21 = vpop.f32.mrf.mxu1 }
 0x273   :  { %v1483_v55 = vadd.f32 %v1482_v49, %v1394_v47  ;;  %v1308_v23 = vadd.f32 %v1307_v21, %v1219_v53 }
 0x275   :  { %v1525_v22 = vpack.c.bf16 %v1483_v55, %v3293_v2 }
 0x277   :  { %1557 = vst [vmem:[%s3522_s3 + $0xc8] sm:$0xff] %v1525_v22 }
 0x278   :  { %v1396_v25 = vpop.f32.mrf.mxu2  ;;  %v1220_v28 = vpop.f32.mrf.mxu0 }
 0x279   :  { %v1397_v33 = vadd.f32 %v1396_v25, %v1308_v23  ;;  %v1485_v7 = vpop.f32.mrf.mxu3  ;;  %v1309_v8 = vpop.f32.mrf.mxu1  ;;  %v1221_v37 = vadd.f32 %v1220_v28, %v3323_v50 }
 0x27b   :  { %v1486_v41 = vadd.f32 %v1485_v7, %v1397_v33  ;;  %v1310_v2 = vadd.f32 %v1309_v8, %v1221_v37 }
 0x27d   :  { %v1526_v6 = vpack.c.bf16 %v1486_v41, %v3300_v17 }
 0x27f   :  { %1558 = vst [vmem:[%s3522_s3 + $0xd0] sm:$0xff] %v1526_v6 }
 0x280   :  { %v1398_v29 = vpop.f32.mrf.mxu2  ;;  %v1223_v35 = vpop.f32.mrf.mxu0 }
 0x281   :  { %v1399_v58 = vadd.f32 %v1398_v29, %v1310_v2  ;;  %v1487_v14 = vpop.f32.mrf.mxu3  ;;  %v1224_v61 = vadd.f32 %v1223_v35, %v3323_v50  ;;  %v1312_v40 = vpop.f32.mrf.mxu1 }
 0x283   :  { %v1488_v36 = vadd.f32 %v1487_v14, %v1399_v58  ;;  %v1313_v42 = vadd.f32 %v1312_v40, %v1224_v61 }
 0x285   :  { %v1527_v43 = vpack.c.bf16 %v1488_v36, %v3303_v34 }
 0x287   :  { %1559 = vst [vmem:[%s3522_s3 + $0xd8] sm:$0xff] %v1527_v43 }
 0x288   :  { %v1401_v17 = vpop.f32.mrf.mxu2  ;;  %v1225_v24 = vpop.f32.mrf.mxu0 }
 0x289   :  { %v1402_v11 = vadd.f32 %v1401_v17, %v1313_v42  ;;  %v1490_v56 = vpop.f32.mrf.mxu3  ;;  %v1314_v62 = vpop.f32.mrf.mxu1  ;;  %v1226_v4 = vadd.f32 %v1225_v24, %v3323_v50 }
 0x28b   :  { %v1491_v57 = vadd.f32 %v1490_v56, %v1402_v11  ;;  %v1315_v34 = vadd.f32 %v1314_v62, %v1226_v4 }
 0x28d   :  { %v1528_v60 = vpack.c.bf16 %v1491_v57, %v3310_v27 }
 0x28f   :  { %1560 = vst [vmem:[%s3522_s3 + $0xe0] sm:$0xff] %v1528_v60 }
 0x290   :  { %v1403_v38 = vpop.f32.mrf.mxu2  ;;  %v1228_v0 = vpop.f32.mrf.mxu0 }
 0x291   :  { %v1404_v30 = vadd.f32 %v1403_v38, %v1315_v34  ;;  %v1492_v63 = vpop.f32.mrf.mxu3  ;;  %v1229_v26 = vadd.f32 %v1228_v0, %v3323_v50  ;;  %v1317_v31 = vpop.f32.mrf.mxu1 }
 0x293   :  { %v1493_v1 = vadd.f32 %v1492_v63, %v1404_v30  ;;  %v1318_v45 = vadd.f32 %v1317_v31, %v1229_v26 }
 0x295   :  { %v1529_v44 = vpack.c.bf16 %v1493_v1, %v3313_v46 }
 0x297   :  { %1561 = vst [vmem:[%s3522_s3 + $0xe8] sm:$0xff] %v1529_v44 }
 0x298   :  { %v1406_v27 = vpop.f32.mrf.mxu2  ;;  %v1230_v3 = vpop.f32.mrf.mxu0 }
 0x299   :  { %v1407_v39 = vadd.f32 %v1406_v27, %v1318_v45  ;;  %v1495_v48 = vpop.f32.mrf.mxu3  ;;  %v1231_v19 = vadd.f32 %v1230_v3, %v3323_v50  ;;  %v1319_v5 = vpop.f32.mrf.mxu1 }
 0x29b   :  { %v1496_v12 = vadd.f32 %v1495_v48, %v1407_v39  ;;  %v1320_v46 = vadd.f32 %v1319_v5, %v1231_v19 }
 0x29d   :  { %v1530_v15 = vpack.c.bf16 %v1496_v12, %v3320_v51 }
 0x29f   :  { %1562 = vst [vmem:[%s3522_s3 + $0xf0] sm:$0xff] %v1530_v15 }
 0x2a0   :  { %v1408_v18 = vpop.f32.mrf.mxu2 }
 0x2a1   :  { %v1409_v13 = vadd.f32 %v1408_v18, %v1320_v46  ;;  %v1497_v9 = vpop.f32.mrf.mxu3 }
 0x2a3   :  { %v1498_v10 = vadd.f32 %v1497_v9, %v1409_v13 }
 0x2a5   :  { %v1531_v16 = vpack.c.bf16 %v1498_v10, %v3326_v32 }
 0x2a7   :  { %1563 = vst [vmem:[%s3522_s3 + $0xf8] sm:$0xff] %v1531_v16 }

</bundles_post_ra>
